<compile_context>
chip_gen: v6e
topology: v6e:2x2x1
jax: 0.10.0
libtpu: 0.0.40
codegen_flags: <defaults>
</compile_context>

<pallas_src>
import functools
import math

import jax
import jax.numpy as jnp
from jax import lax
from jax.experimental import pallas as pl
from jax.experimental.pallas import tpu as pltpu


# Large finite negative instead of -inf: keeps the online softmax NaN-free even when a tile
# row is fully masked (exp underflows to exactly 0, matching softmax-of--inf behavior).
MASK_VALUE = -0.7 * float(jnp.finfo(jnp.float32).max)
MIN_LANES = 128  # vreg lane width; m/l scratch is replicated across this many lanes


def _lane_tile(x, n):
    """Tile a lane-replicated (rows, 128) array to (rows, n*128) lanes."""
    return x if n == 1 else jnp.tile(x, (1, n))


def _resident_spec(block_shape, index_map):
    """BlockSpec for a block whose index never changes: single-buffer it (halves VMEM)."""
    try:
        return pl.BlockSpec(block_shape, index_map, pipeline_mode=pl.Buffered(1))
    except Exception:  # older jax without pipeline_mode / pl.Buffered -> default buffering
        return pl.BlockSpec(block_shape, index_map)


# --------------------------------------------------------------------------------------
# Kernel 1: fused q/k/v projections, head-major outputs (scale folded into Wq^T).
# --------------------------------------------------------------------------------------
def _qkv_proj_kernel(x_ref, wq_ref, wk_ref, wv_ref, q_ref, k_ref, v_ref, *,
                     num_heads, d_k):
    x = x_ref[0]                                                    # (blk_proj, D)
    # TODO(synk): for very large D (v7x 64 MiB VMEM), tile the weight columns (N) and add a
    # K grid axis + f32 accumulator instead of keeping three full (D, D) weights resident.
    q = jnp.dot(x, wq_ref[...], preferred_element_type=jnp.float32)  # scale already folded
    k = jnp.dot(x, wk_ref[...], preferred_element_type=jnp.float32)
    v = jnp.dot(x, wv_ref[...], preferred_element_type=jnp.float32)
    # Emit head-major (B, H, T, d_k) via static, 128-lane-aligned column slices so the flash
    # kernel's K/V blocks DMA as contiguous slabs.
    for h in range(num_heads):
        sl = slice(h * d_k, (h + 1) * d_k)
        q_ref[0, h] = q[:, sl].astype(q_ref.dtype)
        k_ref[0, h] = k[:, sl].astype(k_ref.dtype)
        v_ref[0, h] = v[:, sl].astype(v_ref.dtype)


# --------------------------------------------------------------------------------------
# Kernel 2: flash attention (causal, online softmax).
# Grid: (batch, head, q-tile, kv-tile); kv is the innermost reduction axis.
# --------------------------------------------------------------------------------------
def _flash_attn_kernel(q_ref, k_ref, v_ref, o_ref, m_sc, l_sc, acc_sc, *, blk_q, blk_k):
    qi = pl.program_id(2)
    ki = pl.program_id(3)

    @pl.when(ki == 0)
    def _init():
        m_sc[...] = jnp.full_like(m_sc, MASK_VALUE)
        l_sc[...] = jnp.zeros_like(l_sc)
        acc_sc[...] = jnp.zeros_like(acc_sc)

    q_start = qi * blk_q
    k_start = ki * blk_k
    d_rep = acc_sc.shape[-1] // MIN_LANES

    def scores():
        # QK^T by contracting the last dims — no transposed copy of K through the XLU.
        return lax.dot_general(q_ref[0, 0], k_ref[0, 0], (((1,), (1,)), ((), ())),
                               preferred_element_type=jnp.float32)   # (blk_q, blk_k) f32

    def online_softmax_update(s):
        m_prev = m_sc[...]                                           # (blk_q, 128) replicated
        l_prev = l_sc[...]
        m_curr = jnp.max(s, axis=-1, keepdims=True)                  # (blk_q, 1)
        m_next = jnp.maximum(m_prev, m_curr)                         # (blk_q, 128)
        p = jnp.exp(s - _lane_tile(m_next, blk_k // MIN_LANES))      # f32 softmax math
        alpha = jnp.exp(m_prev - m_next)                             # (blk_q, 128)
        l_sc[...] = alpha * l_prev + jnp.sum(p, axis=-1, keepdims=True)
        v = v_ref[0, 0]
        acc_sc[...] = acc_sc[...] * _lane_tile(alpha, d_rep) + jnp.dot(
            p.astype(v.dtype), v, preferred_element_type=jnp.float32)
        m_sc[...] = m_next

    # Tiles entirely above the diagonal are skipped (and their K/V re-DMA is elided by the
    # clamped kv index_map).  The two live cases are traced separately so the unmasked
    # (majority) case never pays for the iota/compare/select.
    @pl.when(k_start + (blk_k - 1) <= q_start)                       # fully below/on diagonal
    def _unmasked():
        online_softmax_update(scores())

    @pl.when(jnp.logical_and(k_start + (blk_k - 1) > q_start,        # straddles the diagonal
                             k_start <= q_start + (blk_q - 1)))
    def _masked():
        s = scores()
        row = q_start + lax.broadcasted_iota(jnp.int32, (blk_q, blk_k), 0)
        col = k_start + lax.broadcasted_iota(jnp.int32, (blk_q, blk_k), 1)
        online_softmax_update(jnp.where(col > row, MASK_VALUE, s))

    # TODO(synk): attention dropout (attn_pdrop) omitted; forward matches pdrop=0.0.
    @pl.when(ki == pl.num_programs(3) - 1)
    def _finalize():
        inv_l = pl.reciprocal(l_sc[...], approx=True)                # EUP slot, once per q-tile
        o_ref[0, 0] = (acc_sc[...] * _lane_tile(inv_l, d_rep)).astype(o_ref.dtype)


# --------------------------------------------------------------------------------------
# Kernel 3: output projection from head-major attention output.
# out = concat_h(attn_h) @ Wo^T  ==  sum_h attn_h @ Wo^T[h*d_k:(h+1)*d_k, :]
# --------------------------------------------------------------------------------------
def _out_proj_kernel(a_ref, wo_ref, o_ref, *, num_heads):
    acc = jnp.dot(a_ref[0, 0], wo_ref[0], preferred_element_type=jnp.float32)
    for h in range(1, num_heads):
        acc = acc + jnp.dot(a_ref[0, h], wo_ref[h], preferred_element_type=jnp.float32)
    # TODO(synk): for very large D, tile Wo over its output columns instead of full-D blocks.
    o_ref[0] = acc.astype(o_ref.dtype)


# --------------------------------------------------------------------------------------
# Wrapper
# --------------------------------------------------------------------------------------
def multihead_self_attention(x, wq, wk, wv, wo, num_heads: int, *,
                             compute_dtype=jnp.bfloat16,
                             blk_q=256, blk_k=256, blk_proj=256,
                             vmem_limit_bytes=64 * 1024 * 1024):
    """x: (B, T, D); wq/wk/wv/wo: torch-convention Linear weights of shape (D, D)."""
    B, T, D = x.shape
    assert D % num_heads == 0
    d_k = D // num_heads
    # Head slices are taken along the lane (last) dim; keep them 128-lane aligned.
    assert d_k % MIN_LANES == 0, "per-head width d_k must be a multiple of 128 for this layout"

    blk_q, blk_k, blk_proj = min(blk_q, T), min(blk_k, T), min(blk_proj, T)
    assert T % blk_q == 0 and T % blk_k == 0 and T % blk_proj == 0
    assert blk_q % 8 == 0 and blk_proj % 8 == 0 and blk_k % MIN_LANES == 0

    out_dtype = x.dtype
    if compute_dtype is None:
        compute_dtype = x.dtype
    itemsize = jnp.dtype(compute_dtype).itemsize
    scale = 1.0 / math.sqrt(d_k)

    # torch Linear computes x @ W.T; pre-transpose once, fold 1/sqrt(d_k) into Wq^T, and
    # reshape Wo^T head-major so each attention head contracts with its own (d_k, D) slab.
    wq_t = (wq.T * scale).astype(compute_dtype)
    wk_t = wk.T.astype(compute_dtype)
    wv_t = wv.T.astype(compute_dtype)
    wo_r = wo.T.reshape(num_heads, d_k, D).astype(compute_dtype)
    x_c = x.astype(compute_dtype)

    # ---- 1) fused q/k/v projections (head-major outputs) -----------------------------
    n_proj = T // blk_proj
    w_spec = _resident_spec((D, D), lambda b, i: (0, 0))
    x_spec = pl.BlockSpec((1, blk_proj, D), lambda b, i: (b, i, 0))
    head_out_spec = pl.BlockSpec((1, num_heads, blk_proj, d_k), lambda b, i: (b, 0, i, 0))

    qkv_cost = pl.CostEstimate(
        flops=2 * B * T * D * D * 3,
        transcendentals=0,
        bytes_accessed=int((4 * B * T * D + 3 * D * D) * itemsize))

    q, k, v = pl.pallas_call(
        functools.partial(_qkv_proj_kernel, num_heads=num_heads, d_k=d_k),
        out_shape=[jax.ShapeDtypeStruct((B, num_heads, T, d_k), compute_dtype)] * 3,
        grid_spec=pltpu.PrefetchScalarGridSpec(
            num_scalar_prefetch=0,
            grid=(B, n_proj),
            in_specs=[x_spec, w_spec, w_spec, w_spec],
            out_specs=[head_out_spec] * 3,
        ),
        compiler_params=pltpu.CompilerParams(
            dimension_semantics=("parallel", "parallel"),
            vmem_limit_bytes=vmem_limit_bytes),
        cost_estimate=qkv_cost,
    )(x_c, wq_t, wk_t, wv_t)

    # ---- 2) flash attention -----------------------------------------------------------
    n_q, n_kv = T // blk_q, T // blk_k

    def q_index_map(b, h, qi, ki):
        return (b, h, qi, 0)

    def kv_index_map(b, h, qi, ki):
        # Clamp to the last causally-valid kv block for this q tile: skipped above-diagonal
        # steps then repeat the previous block index and Pallas elides the K/V re-DMA.
        last_valid = (qi * blk_q + (blk_q - 1)) // blk_k
        return (b, h, jnp.minimum(ki, last_valid), 0)

    q_spec = pl.BlockSpec((1, 1, blk_q, d_k), q_index_map)
    # TODO(synk): sweep pipeline_mode=pl.Buffered(3) on kv_spec once profiles show exposed DMA.
    kv_spec = pl.BlockSpec((1, 1, blk_k, d_k), kv_index_map)
    o_spec = pl.BlockSpec((1, 1, blk_q, d_k), q_index_map)

    flash_cost = pl.CostEstimate(
        flops=2 * B * num_heads * T * T * d_k,            # ~half of dense (causal)
        transcendentals=B * num_heads * T * T // 2,
        bytes_accessed=int(4 * B * T * D * itemsize))

    attn = pl.pallas_call(
        functools.partial(_flash_attn_kernel, blk_q=blk_q, blk_k=blk_k),
        out_shape=jax.ShapeDtypeStruct((B, num_heads, T, d_k), compute_dtype),
        grid_spec=pltpu.PrefetchScalarGridSpec(
            num_scalar_prefetch=0,
            grid=(B, num_heads, n_q, n_kv),
            in_specs=[q_spec, kv_spec, kv_spec],
            out_specs=o_spec,
            scratch_shapes=[
                pltpu.VMEM((blk_q, MIN_LANES), jnp.float32),   # running max (lane-replicated)
                pltpu.VMEM((blk_q, MIN_LANES), jnp.float32),   # running sum (lane-replicated)
                pltpu.VMEM((blk_q, d_k), jnp.float32),         # output accumulator
            ],
        ),
        compiler_params=pltpu.CompilerParams(
            dimension_semantics=("parallel", "parallel", "parallel", "arbitrary"),
            vmem_limit_bytes=vmem_limit_bytes),
        cost_estimate=flash_cost,
    )(q, k, v)

    # ---- 3) output projection ----------------------------------------------------------
    attn_spec = pl.BlockSpec((1, num_heads, blk_proj, d_k), lambda b, i: (b, 0, i, 0))
    wo_spec = _resident_spec((num_heads, d_k, D), lambda b, i: (0, 0, 0))
    out_spec = pl.BlockSpec((1, blk_proj, D), lambda b, i: (b, i, 0))

    out_cost = pl.CostEstimate(
        flops=2 * B * T * D * D,
        transcendentals=0,
        bytes_accessed=int((2 * B * T * D + D * D) * itemsize))

    out = pl.pallas_call(
        functools.partial(_out_proj_kernel, num_heads=num_heads),
        out_shape=jax.ShapeDtypeStruct((B, T, D), out_dtype),
        grid_spec=pltpu.PrefetchScalarGridSpec(
            num_scalar_prefetch=0,
            grid=(B, n_proj),
            in_specs=[attn_spec, wo_spec],
            out_specs=out_spec,
        ),
        compiler_params=pltpu.CompilerParams(
            dimension_semantics=("parallel", "parallel"),
            vmem_limit_bytes=vmem_limit_bytes),
        cost_estimate=out_cost,
    )(attn, wo_r)

    return out


# --------------------------------------------------------------------------------------
# Pure-JAX reference mirroring the PyTorch forward (pdrop=0).
# --------------------------------------------------------------------------------------
def reference_mha(x, wq, wk, wv, wo, num_heads: int):
    B, T, D = x.shape
    d_k = D // num_heads
    q = x @ wq.T
    k = x @ wk.T
    v = x @ wv.T
    q = q.reshape(B, T, num_heads, d_k).transpose(0, 2, 1, 3)
    k = k.reshape(B, T, num_heads, d_k).transpose(0, 2, 1, 3)
    v = v.reshape(B, T, num_heads, d_k).transpose(0, 2, 1, 3)
    s = jnp.einsum("bhqd,bhkd->bhqk", q, k) / math.sqrt(d_k)
    mask = jnp.triu(jnp.ones((T, T), dtype=bool), k=1)
    s = jnp.where(mask, -jnp.inf, s)
    p = jax.nn.softmax(s, axis=-1)
    o = jnp.einsum("bhqk,bhkd->bhqd", p, v)
    o = o.transpose(0, 2, 1, 3).reshape(B, T, D)
    return o @ wo.T


if __name__ == "__main__":
    # Layout-aligned example: B=2, T=512, d_model=256, num_heads=2 (d_k=128).
    # T=512 with 256-wide tiles exercises the skip / straddle / fully-unmasked paths and the
    # causal DMA clamping (n_q = n_kv = 2).
    B, T, D, H = 2, 512, 256, 2

    key = jax.random.PRNGKey(0)
    kx, kq, kk, kv, ko = jax.random.split(key, 5)

    x = jax.random.normal(kx, (B, T, D), dtype=jnp.float32)
    # torch.nn.Linear(d_model, d_model) weights: shape (out_features, in_features) = (D, D)
    bound = 1.0 / math.sqrt(D)
    wq = jax.random.uniform(kq, (D, D), jnp.float32, -bound, bound)
    wk = jax.random.uniform(kk, (D, D), jnp.float32, -bound, bound)
    wv = jax.random.uniform(kv, (D, D), jnp.float32, -bound, bound)
    wo = jax.random.uniform(ko, (D, D), jnp.float32, -bound, bound)

    ref = reference_mha(x, wq, wk, wv, wo, num_heads=H)

    # f32 compute path: tight check of the kernel math (tolerance allows the approx EUP
    # reciprocal and the online-softmax accumulation order).
    out_f32 = multihead_self_attention(x, wq, wk, wv, wo, num_heads=H,
                                       compute_dtype=jnp.float32)
    out_f32 = jax.block_until_ready(out_f32)
    assert out_f32.shape == (B, T, D)
    assert jnp.allclose(out_f32, ref, atol=2e-3, rtol=2e-3), "f32 kernel mismatch vs reference"

    # Default path: bf16 MXU operands, f32 accumulation / softmax — looser tolerance.
    out = multihead_self_attention(x, wq, wk, wv, wo, num_heads=H)
    out = jax.block_until_ready(out)
    assert out.shape == (B, T, D)
    assert jnp.allclose(out.astype(jnp.float32), ref, atol=5e-2, rtol=5e-2), \
        "bf16 kernel mismatch vs reference"

    print("KERNEL_OK")
</pallas_src>

<mosaic_0001>
module attributes {stable_mosaic.version = 11 : i64} {
  func.func @_qkv_proj_kernel(%arg0: i32, %arg1: i32, %arg2: memref<1x256x256xf32, #tpu.memory_space<vmem>>, %arg3: memref<256x256xf32, #tpu.memory_space<vmem>>, %arg4: memref<256x256xf32, #tpu.memory_space<vmem>>, %arg5: memref<256x256xf32, #tpu.memory_space<vmem>>, %arg6: memref<1x2x256x128xf32, #tpu.memory_space<vmem>>, %arg7: memref<1x2x256x128xf32, #tpu.memory_space<vmem>>, %arg8: memref<1x2x256x128xf32, #tpu.memory_space<vmem>>) attributes {dimension_semantics = [#tpu.dimension_semantics<parallel>, #tpu.dimension_semantics<parallel>], iteration_bounds = array<i64: 2, 2>, scalar_prefetch = 0 : i64, scratch_operands = 0 : i64, tpu.core_type = #tpu.core_type<tc>, window_params = [{transform_indices = @transform_0, window_bounds = array<i64: 1, 256, 256>}, {pipeline_mode = #tpu.pipeline_mode<synchronous>, transform_indices = @transform_1, window_bounds = array<i64: 256, 256>}, {pipeline_mode = #tpu.pipeline_mode<synchronous>, transform_indices = @transform_2, window_bounds = array<i64: 256, 256>}, {pipeline_mode = #tpu.pipeline_mode<synchronous>, transform_indices = @transform_3, window_bounds = array<i64: 256, 256>}, {transform_indices = @transform_4, window_bounds = array<i64: 1, 2, 256, 128>}, {transform_indices = @transform_5, window_bounds = array<i64: 1, 2, 256, 128>}, {transform_indices = @transform_6, window_bounds = array<i64: 1, 2, 256, 128>}]} {
    %c0 = arith.constant 0 : index
    %c0_0 = arith.constant 0 : index
    %c0_1 = arith.constant 0 : index
    %0 = vector.load %arg2[%c0, %c0_0, %c0_1] : memref<1x256x256xf32, #tpu.memory_space<vmem>>, vector<1x256x256xf32>
    %1 = vector.shape_cast %0 : vector<1x256x256xf32> to vector<256x256xf32>
    %c0_2 = arith.constant 0 : index
    %c0_3 = arith.constant 0 : index
    %2 = vector.load %arg3[%c0_2, %c0_3] : memref<256x256xf32, #tpu.memory_space<vmem>>, vector<256x256xf32>
    %cst = arith.constant dense<0.000000e+00> : vector<256x256xf32>
    %3 = tpu.matmul %1, %2, %cst {dimension_numbers = #tpu.dot_dimension_numbers<[1], [0], [0], [1], [0, 0, 1, 1], [], []>} : vector<256x256xf32>, vector<256x256xf32>, vector<256x256xf32> -> vector<256x256xf32>
    %c0_4 = arith.constant 0 : index
    %c0_5 = arith.constant 0 : index
    %4 = vector.load %arg4[%c0_4, %c0_5] : memref<256x256xf32, #tpu.memory_space<vmem>>, vector<256x256xf32>
    %cst_6 = arith.constant dense<0.000000e+00> : vector<256x256xf32>
    %5 = tpu.matmul %1, %4, %cst_6 {dimension_numbers = #tpu.dot_dimension_numbers<[1], [0], [0], [1], [0, 0, 1, 1], [], []>} : vector<256x256xf32>, vector<256x256xf32>, vector<256x256xf32> -> vector<256x256xf32>
    %c0_7 = arith.constant 0 : index
    %c0_8 = arith.constant 0 : index
    %6 = vector.load %arg5[%c0_7, %c0_8] : memref<256x256xf32, #tpu.memory_space<vmem>>, vector<256x256xf32>
    %cst_9 = arith.constant dense<0.000000e+00> : vector<256x256xf32>
    %7 = tpu.matmul %1, %6, %cst_9 {dimension_numbers = #tpu.dot_dimension_numbers<[1], [0], [0], [1], [0, 0, 1, 1], [], []>} : vector<256x256xf32>, vector<256x256xf32>, vector<256x256xf32> -> vector<256x256xf32>
    %8 = vector.extract_strided_slice %3 {offsets = [0, 0], sizes = [256, 128], strides = [1, 1]} : vector<256x256xf32> to vector<256x128xf32>
    %c0_10 = arith.constant 0 : index
    %c0_11 = arith.constant 0 : index
    %c0_12 = arith.constant 0 : index
    %c0_13 = arith.constant 0 : index
    %9 = vector.load %arg6[%c0_10, %c0_11, %c0_12, %c0_13] : memref<1x2x256x128xf32, #tpu.memory_space<vmem>>, vector<1x1x256x128xf32>
    %10 = vector.shape_cast %9 : vector<1x1x256x128xf32> to vector<256x128xf32>
    %11 = vector.shape_cast %8 : vector<256x128xf32> to vector<1x1x256x128xf32>
    tpu.vector_store %arg6[%c0_10, %c0_11, %c0_12, %c0_13], %11 {strides = array<i32>} : memref<1x2x256x128xf32, #tpu.memory_space<vmem>>, vector<1x1x256x128xf32>,
    %12 = vector.extract_strided_slice %5 {offsets = [0, 0], sizes = [256, 128], strides = [1, 1]} : vector<256x256xf32> to vector<256x128xf32>
    %c0_14 = arith.constant 0 : index
    %c0_15 = arith.constant 0 : index
    %c0_16 = arith.constant 0 : index
    %c0_17 = arith.constant 0 : index
    %13 = vector.load %arg7[%c0_14, %c0_15, %c0_16, %c0_17] : memref<1x2x256x128xf32, #tpu.memory_space<vmem>>, vector<1x1x256x128xf32>
    %14 = vector.shape_cast %13 : vector<1x1x256x128xf32> to vector<256x128xf32>
    %15 = vector.shape_cast %12 : vector<256x128xf32> to vector<1x1x256x128xf32>
    tpu.vector_store %arg7[%c0_14, %c0_15, %c0_16, %c0_17], %15 {strides = array<i32>} : memref<1x2x256x128xf32, #tpu.memory_space<vmem>>, vector<1x1x256x128xf32>,
    %16 = vector.extract_strided_slice %7 {offsets = [0, 0], sizes = [256, 128], strides = [1, 1]} : vector<256x256xf32> to vector<256x128xf32>
    %c0_18 = arith.constant 0 : index
    %c0_19 = arith.constant 0 : index
    %c0_20 = arith.constant 0 : index
    %c0_21 = arith.constant 0 : index
    %17 = vector.load %arg8[%c0_18, %c0_19, %c0_20, %c0_21] : memref<1x2x256x128xf32, #tpu.memory_space<vmem>>, vector<1x1x256x128xf32>
    %18 = vector.shape_cast %17 : vector<1x1x256x128xf32> to vector<256x128xf32>
    %19 = vector.shape_cast %16 : vector<256x128xf32> to vector<1x1x256x128xf32>
    tpu.vector_store %arg8[%c0_18, %c0_19, %c0_20, %c0_21], %19 {strides = array<i32>} : memref<1x2x256x128xf32, #tpu.memory_space<vmem>>, vector<1x1x256x128xf32>,
    %20 = vector.extract_strided_slice %3 {offsets = [0, 128], sizes = [256, 128], strides = [1, 1]} : vector<256x256xf32> to vector<256x128xf32>
    %c0_22 = arith.constant 0 : index
    %c1 = arith.constant 1 : index
    %c0_23 = arith.constant 0 : index
    %c0_24 = arith.constant 0 : index
    %21 = vector.load %arg6[%c0_22, %c1, %c0_23, %c0_24] : memref<1x2x256x128xf32, #tpu.memory_space<vmem>>, vector<1x1x256x128xf32>
    %22 = vector.shape_cast %21 : vector<1x1x256x128xf32> to vector<256x128xf32>
    %23 = vector.shape_cast %20 : vector<256x128xf32> to vector<1x1x256x128xf32>
    tpu.vector_store %arg6[%c0_22, %c1, %c0_23, %c0_24], %23 {strides = array<i32>} : memref<1x2x256x128xf32, #tpu.memory_space<vmem>>, vector<1x1x256x128xf32>,
    %24 = vector.extract_strided_slice %5 {offsets = [0, 128], sizes = [256, 128], strides = [1, 1]} : vector<256x256xf32> to vector<256x128xf32>
    %c0_25 = arith.constant 0 : index
    %c1_26 = arith.constant 1 : index
    %c0_27 = arith.constant 0 : index
    %c0_28 = arith.constant 0 : index
    %25 = vector.load %arg7[%c0_25, %c1_26, %c0_27, %c0_28] : memref<1x2x256x128xf32, #tpu.memory_space<vmem>>, vector<1x1x256x128xf32>
    %26 = vector.shape_cast %25 : vector<1x1x256x128xf32> to vector<256x128xf32>
    %27 = vector.shape_cast %24 : vector<256x128xf32> to vector<1x1x256x128xf32>
    tpu.vector_store %arg7[%c0_25, %c1_26, %c0_27, %c0_28], %27 {strides = array<i32>} : memref<1x2x256x128xf32, #tpu.memory_space<vmem>>, vector<1x1x256x128xf32>,
    %28 = vector.extract_strided_slice %7 {offsets = [0, 128], sizes = [256, 128], strides = [1, 1]} : vector<256x256xf32> to vector<256x128xf32>
    %c0_29 = arith.constant 0 : index
    %c1_30 = arith.constant 1 : index
    %c0_31 = arith.constant 0 : index
    %c0_32 = arith.constant 0 : index
    %29 = vector.load %arg8[%c0_29, %c1_30, %c0_31, %c0_32] : memref<1x2x256x128xf32, #tpu.memory_space<vmem>>, vector<1x1x256x128xf32>
    %30 = vector.shape_cast %29 : vector<1x1x256x128xf32> to vector<256x128xf32>
    %31 = vector.shape_cast %28 : vector<256x128xf32> to vector<1x1x256x128xf32>
    tpu.vector_store %arg8[%c0_29, %c1_30, %c0_31, %c0_32], %31 {strides = array<i32>} : memref<1x2x256x128xf32, #tpu.memory_space<vmem>>, vector<1x1x256x128xf32>,
    return
  }
  func.func @transform_0(%arg0: i32, %arg1: i32) -> (i32, i32, i32) {
    %c0_i32 = arith.constant 0 : i32
    %c0_i32_0 = arith.constant 0 : i32
    return %arg0, %arg1, %c0_i32 : i32, i32, i32
  }
  func.func @transform_1(%arg0: i32, %arg1: i32) -> (i32, i32) {
    %c0_i32 = arith.constant 0 : i32
    %c0_i32_0 = arith.constant 0 : i32
    %c0_i32_1 = arith.constant 0 : i32
    return %c0_i32, %c0_i32_0 : i32, i32
  }
  func.func @transform_2(%arg0: i32, %arg1: i32) -> (i32, i32) {
    %c0_i32 = arith.constant 0 : i32
    %c0_i32_0 = arith.constant 0 : i32
    %c0_i32_1 = arith.constant 0 : i32
    return %c0_i32, %c0_i32_0 : i32, i32
  }
  func.func @transform_3(%arg0: i32, %arg1: i32) -> (i32, i32) {
    %c0_i32 = arith.constant 0 : i32
    %c0_i32_0 = arith.constant 0 : i32
    %c0_i32_1 = arith.constant 0 : i32
    return %c0_i32, %c0_i32_0 : i32, i32
  }
  func.func @transform_4(%arg0: i32, %arg1: i32) -> (i32, i32, i32, i32) {
    %c0_i32 = arith.constant 0 : i32
    %c0_i32_0 = arith.constant 0 : i32
    %c0_i32_1 = arith.constant 0 : i32
    return %arg0, %c0_i32, %arg1, %c0_i32_0 : i32, i32, i32, i32
  }
  func.func @transform_5(%arg0: i32, %arg1: i32) -> (i32, i32, i32, i32) {
    %c0_i32 = arith.constant 0 : i32
    %c0_i32_0 = arith.constant 0 : i32
    %c0_i32_1 = arith.constant 0 : i32
    return %arg0, %c0_i32, %arg1, %c0_i32_0 : i32, i32, i32, i32
  }
  func.func @transform_6(%arg0: i32, %arg1: i32) -> (i32, i32, i32, i32) {
    %c0_i32 = arith.constant 0 : i32
    %c0_i32_0 = arith.constant 0 : i32
    %c0_i32_1 = arith.constant 0 : i32
    return %arg0, %c0_i32, %arg1, %c0_i32_0 : i32, i32, i32, i32
  }
}

</mosaic_0001>

<bundles_post_ra>
// kernel: tpu_custom_call.1
= control target key start
LH: loop header
LB: loop body
LE: loop exit
PB: predicated region body
PF: predicated region fallthrough
CT: control target
= control target key end

     0   :  { %s3372_s0 = inlined_call_operand.hbm [shape: f32[2,512,256], index: 0, kind: input, shape index: {}]   ;;  %s3373_s1 = inlined_call_operand.hbm [shape: f32[256,256], index: 1, kind: input, shape index: {}]   ;;  %s3374_s2 = inlined_call_operand.hbm [shape: f32[256,256], index: 2, kind: input, shape index: {}]   ;;  %s3375_s3 = inlined_call_operand.hbm [shape: f32[256,256], index: 3, kind: input, shape index: {}]   ;;  %s3376_s4 = inlined_call_operand.hbm [shape: f32[2,2,512,128], index: 4, kind: output, shape index: {0}]   ;;  %s3377_s5 = inlined_call_operand.hbm [shape: f32[2,2,512,128], index: 5, kind: output, shape index: {1}]   ;;  %s3378_s6 = inlined_call_operand.hbm [shape: f32[2,2,512,128], index: 6, kind: output, shape index: {2}]  }
   0x1   :  { %3407 = sst [smem:[#allocation39_spill]] %s3373_s1 }
   0x2   :  { %3408 = sst [smem:[#allocation40_spill]] %s3374_s2 }
   0x3   :  { %3409 = sst [smem:[#allocation41_spill]] %s3375_s3 }
   0x4   :  { %3410 = sst [smem:[#allocation42_spill]] %s3378_s6 }
   0x5   :  { %12 = vsyncpa [#allocation3], 0 }
   0x6   :  { %14 = vsyncpa [#allocation3 + $0x1], 0 }
   0x7   :  { %15 = vsyncpa [#allocation6], 0 }
   0x8   :  { %16 = vsyncpa [#allocation9], 0 }
   0x9   :  { %17 = vsyncpa [#allocation4], 0 }
   0xa   :  { %19 = vsyncpa [#allocation4 + $0x1], 0 }
   0xb   :  { %20 = vsyncpa [#allocation12], 0 }
   0xc   :  { %22 = vsyncpa [#allocation12 + $0x1], 0  ;;  %s2505_s21 = smov 0   ;;  %s2507_s22 = smov 0  }
   0xd   :  { %s2509_s23 = smov 0   ;;  %s2511_s24 = smov 0  }
   0xe   :  { %s2513_s25 = smov 0   ;;  %s2515_s26 = smov 0  }
   0xf   :  { %s2517_s27 = smov 0   ;;  %s2519_s28 = smov 0  }
  0x10 LB: > { %3411 = sst [smem:[#allocation25_spill]] %s2413_s21  ;;  %s2546_s29 = sadd.s32 4294967295, %s2441_s28   ;;  %s2441_s28 = sphi %s2519_s28, %s28_s28   ;;  %s2437_s27 = sphi %s2517_s27, %s3461_s27   ;;  %s2433_s26 = sphi %s2515_s26, %s3456_s26   ;;  %s2429_s25 = sphi %s2513_s25, %s3460_s25   ;;  %s2425_s24 = sphi %s2511_s24, %s3455_s24   ;;  %s2421_s23 = sphi %s2509_s23, %s3459_s23   ;;  %s2417_s22 = sphi %s2507_s22, %s3458_s22   ;;  %s2413_s21 = sphi %s2505_s21, %s3457_s21  }
  0x11   : > { %3412 = sst [smem:[#allocation26_spill]] %s2433_s26  ;;  %s3380_s30 = sadd.s32 4294967294, %s2441_s28  }
  0x12   : > { %p62_p0 = scmp.ne.s32.totalorder %s2417_s22, %s2413_s21  ;;  %p3379_p1 = scmp.eq.s32.totalorder %s2546_s29, 0 }
  0x13   : > { %p151_p2 = scmp.eq.s32.totalorder %s2546_s29, 3  ;;  %p157_p3 = scmp.eq.s32.totalorder %s3380_s30, 3 }
  0x14   : > { %p2557_p4 = por %p3379_p1, %p62_p0  ;;  %p1900_p5 = scmp.ge.s32.totalorder %s2441_s28, 1 }
  0x15   : > { %p2562_p6 = por %p157_p3, %p62_p0  ;;  %p220_p7 = scmp.lt.s32.totalorder %s2441_s28, 5 }
  0x16   : > { %s2443_s10 = smov [#allocation5]   ;;  %s2444_s13 = smov [#allocation7]  }
  0x17   : > { %s3414_s8 = scalar_select %p2562_p6, 1, 0 }
  0x18   : > { %p2567_p8 = pnand %p1900_p5, %p220_p7  ;;  %s232_s11 = sshll.u32 %s2443_s10, 4  ;;  %s233_s11 = int_to_ptr.vmem [resolvable:$true] %s232_s11 }
  0x19   : > { %3415 = sst [smem:[#allocation27_spill]] %s3414_s8  ;;  %s245_s14 = sshll.u32 %s2444_s13, 4  ;;  %s246_s14 = int_to_ptr.vmem [resolvable:$true] %s245_s14 }
  0x1a   : > { %p2131_p9 = pneg %p2567_p8  ;;  %s2445_s15 = smov [#allocation8]  }
  0x1b   : > { %s258_s16 = sshll.u32 %s2445_s15, 4  ;;  %s2264_s17 = scalar_lea.vmem %s233_s11, 8192  ;;  %s259_s16 = int_to_ptr.vmem [resolvable:$true] %s258_s16 }
  0x1c   : > { %p2575_p10 = pnand %p2131_p9, %p3379_p1  ;;  %p2265_p12 = scmp.ne.s32.totalorder %s233_s11, %s2264_s17 }
  0x1d   : > { %p2272_p3 = scmp.lt.s32.totalorder %s233_s11, %s233_s11  ;;  %p2273_p5 = scmp.lt.s32.totalorder %s2264_s17, %s2264_s17 }
  0x1e   : > { %p2255_p11 = pneg %p2575_p10 }
  0x1f   : > { %p2274_p7 = por %p2273_p5, %p2272_p3 }
  0x20   : > { %p2267_p13 = pnand %p2265_p12, %p2255_p11 }
  0x22   : > { %p2268_p0 = pneg %p2267_p13 }
  0x24   : > { %p2275_p9 = pnand %p2274_p7, %p2268_p0 }
  0x26   : > { %2278 = shalt.err (!%p2275_p9)
}
  0x27   : > { %s3381_s18 = smov 256   ;;  %s3382_s19 = smov 16  }
  0x28   : > { %s3418_s1 = sld [smem:[#allocation39_spill]]  ;;  %s2290_s13 = scalar_lea.vmem %s246_s14, 8192 }
  0x29   : > { %p2291_p12 = scmp.ne.s32.totalorder %s246_s14, %s2290_s13  ;;  %p2298_p0 = scmp.lt.s32.totalorder %s246_s14, %s246_s14 }
  0x2a   : > { %p2299_p5 = scmp.lt.s32.totalorder %s2290_s13, %s2290_s13 }
  0x2b   : > { %p2293_p13 = pnand %p2291_p12, %p2255_p11 }
  0x2c   : > { %p2300_p7 = por %p2299_p5, %p2298_p0 }
  0x2d   : > { %p2294_p3 = pneg %p2293_p13 }
  0x2e   : > { %2134 = dma.hbm_to_vmem [thread:$0]  (!%p2575_p10), %s3418_s1, 8192, %s233_s11, [#allocation6], %s3381_s18, %s3381_s18, %s3382_s19  }
  0x2f   : > { %p2301_p9 = pnand %p2300_p7, %p2294_p3 }
  0x31   : > { %2304 = shalt.err (!%p2301_p9)
}
  0x32   : > { %s3419_s2 = sld [smem:[#allocation40_spill]]  ;;  %s2316_s11 = scalar_lea.vmem %s259_s16, 8192 }
  0x33   : > { %p2317_p1 = scmp.ne.s32.totalorder %s259_s16, %s2316_s11  ;;  %p2324_p0 = scmp.lt.s32.totalorder %s259_s16, %s259_s16 }
  0x34   : > { %p2325_p3 = scmp.lt.s32.totalorder %s2316_s11, %s2316_s11 }
  0x35   : > { %p2319_p12 = pnand %p2317_p1, %p2255_p11 }
  0x36   : > { %p2326_p5 = por %p2325_p3, %p2324_p0 }
  0x37   : > { %p2320_p13 = pneg %p2319_p12 }
  0x38   : > { %2137 = dma.hbm_to_vmem [thread:$0]  (!%p2575_p10), %s3419_s2, 8192, %s246_s14, [#allocation6], %s3381_s18, %s3381_s18, %s3382_s19  }
  0x39   : > { %p2327_p7 = pnand %p2326_p5, %p2320_p13 }
  0x3b   : > { %2330 = shalt.err (!%p2327_p7)
}
  0x3c   : > { %s3420_s3 = sld [smem:[#allocation41_spill]]  ;;  %s37_s12 = sadd.s32 1, %s2433_s26 }
  0x3d   : > { %p38_p1 = scmp.ge.s32.totalorder %s37_s12, 2  ;;  %s40_s14 = sadd.s32 1, %s2437_s27 }
  0x3e   : > { %s49_s13 = sadd.s32 1, %s2421_s23  ;;  %p56_p11 = scmp.ne.s32.totalorder %s2421_s23, %s2417_s22 }
  0x3f   : > { %s3463_s12 = smov (%p38_p1, %s37_s12), 0  ;;  %s3465_s14 = smov (!%p38_p1, %s40_s14), %s2437_s27 }
  0x40   : > { %3421 = sst [smem:[#allocation28_spill]] %s3463_s12  ;;  %s45_s15 = ssub.s32 %s2433_s26, %s3463_s12 }
  0x41   : > { %p57_p9 = scmp.eq.s32.totalorder %s2441_s28, 0  ;;  %p42_p12 = scmp.ge.s32.totalorder %s3465_s14, 2 }
  0x42   : > { %2140 = dma.hbm_to_vmem [thread:$0]  (!%p2575_p10), %s3420_s3, 8192, %s259_s16, [#allocation9], %s3381_s18, %s3381_s18, %s3382_s19  }
  0x43   : > { %p2627_p13 = por %p151_p2, %p56_p11  ;;  %p2631_p10 = por %p57_p9, %p56_p11 }
  0x44   : > { %p2158_p0 = scmp.lt.s32.totalorder %s2441_s28, 4  ;;  %s3467_s14 = smov (%p42_p12, %s3465_s14), 0 }
  0x45   : > { %s272_s11 = sand.u32 1, %s2421_s23   ;;  %s2028_s20 = sshll.u32 %s2433_s26, 6 }
  0x46   : > { %s44_s10 = ssub.s32 %s2437_s27, %s3467_s14  ;;  %s1905_s18 = sshll.u32 %s272_s11, 9 }
  0x47   : > { %s46_s30 = sor.u32 %s45_s15, %s44_s10  ;;  %s1908_s19 = sshll.u32 %s2437_s27, 7 }
  0x48   : > { %p47_p3 = scmp.eq.s32.totalorder %s46_s30, 0  ;;  %s276_s1 = scalar_lea.vmem [#allocation2], %s1905_s18 }
  0x49   : > { %s286_s2 = sshll.u32 %s276_s1, 4  ;;  %s283_s12 = sadd.s32 %s2028_s20, %s1908_s19  ;;  %s287_s2 = int_to_ptr.vmem [resolvable:$true] %s286_s2 }
  0x4a   : > { %s2644_s3 = scalar_select %p47_p3, %s2421_s23, %s49_s13  }
  0x4b   : > { %s1909_s8 = sshll.u32 %s283_s12, 7  ;;  %p2650_p2 = pnand %p2158_p0, %p2631_p10 }
  0x4c   : > { %s285_s15 = scalar_lea.hbm %s3372_s0, %s1909_s8  ;;  %s273_s30 = scalar_lea.sflag [#allocation3], %s272_s11 }
  0x4d   : > { %p2333_p5 = pneg %p2650_p2  ;;  %s2344_s1 = scalar_lea.vmem %s287_s2, 8192 }
  0x4e   : > { %p2345_p7 = scmp.ne.s32.totalorder %s287_s2, %s2344_s1  ;;  %s2448_s18 = smov [#allocation2]  }
  0x4f   : > { %s2349_s19 = sshll.u32 %s2448_s18, 4  ;;  %s2350_s19 = int_to_ptr.vmem [resolvable:$false] %s2349_s19 }
  0x50   : > { %p2347_p1 = pnand %p2345_p7, %p2333_p5  ;;  %s2351_s12 = scalar_lea.vmem %s2350_s19, 16384 }
  0x51   : > { %p2352_p9 = scmp.lt.s32.totalorder %s287_s2, %s2350_s19  ;;  %p2353_p12 = scmp.lt.s32.totalorder %s2351_s12, %s2344_s1 }
  0x52   : > { %p2348_p11 = pneg %p2347_p1 }
  0x53   : > { %p2354_p10 = por %p2353_p12, %p2352_p9 }
  0x55   : > { %p2355_p0 = pnand %p2354_p10, %p2348_p11 }
  0x57   : > { %2358 = shalt.err (!%p2355_p0)
}
  0x58   : > { %s3425_s6 = smov 16   ;;  %s3426_s26 = smov 256  }
  0x59   : > { %2144 = dma.hbm_to_vmem [thread:$0]  (!%p2650_p2), %s285_s15, 8192, %s287_s2, %s273_s30, %s3426_s26, %s3426_s26, %s3425_s6  }
  0x5a   : > { %298 = sbr.rel (%p2567_p8) target bundleno = 616 (0x268), region = 36 }
  0x5f   : > { %s2667_s8 = sand.u32 1, %s2417_s22  }
  0x60   : > { %s2670_s13 = sshll.u32 %s2667_s8, 9  ;;  %s301_s16 = scalar_lea.sflag [#allocation3], %s2667_s8 }
  0x61   : > { %s2674_s11 = scalar_lea.vmem [#allocation2], %s2670_s13 }
  0x62   : > { %2392 = dma.done.wait (%p2557_p4), %s301_s16, 8192  }
  0x63   : > { %2394 = vsyncadd (%p2557_p4), %s301_s16, 4294959104  ;;  %p3427_p3 = scmp.eq.s32.totalorder %s2546_s29, 0 }
  0x65   : > { %2396 = dma.done.wait (%p3427_p3), [#allocation6], 16384   ;;  %p3428_p8 = pmov %p3427_p3 }
  0x66   : > { %p3429_p2 = pmov %p3427_p3 }
  0x67   : > { %2398 = vsyncadd (%p3428_p8), [#allocation6], 4294950912 }
  0x68   : > { %2400 = dma.done.wait (%p3429_p2), [#allocation9], 8192   ;;  %p3430_p5 = pmov %p3429_p2 }
  0x69   : > { %v454_v0 = vld [vmem:[#allocation5 + $0xf8] sm:$0xff]  ;;  %v453_v1 = vld [vmem:[#allocation5 + $0xf0] sm:$0xff]  ;;  %v452_v2 = vld [vmem:[#allocation5 + $0xe8] sm:$0xff]  ;;  %s3047_s2 = scalar_lea.vmem [#allocation10], %s2670_s13  ;;  %s1586_s21 = sand.u32 1, %s2546_s29  }
  0x6a   : > { %2402 = vsyncadd (%p3430_p5), [#allocation9], 4294959104  ;;  %487 = vmatprep.subr.mxu0 %v454_v0  ;;  %2029 = vmatprep.subr.mxu1 %v454_v0  ;;  %v451_v3 = vld [vmem:[#allocation5 + $0xe0] sm:$0xff]  ;;  %v450_v4 = vld [vmem:[#allocation5 + $0xd8] sm:$0xff]  ;;  %s3141_s7 = scalar_lea.vmem [#allocation11], %s2670_s13  ;;  %s3145_s9 = scalar_lea.vmem [#allocation13], %s2670_s13 }
  0x6b   : > { %488 = vmatpush1.msra.mxu0 %v453_v1  ;;  %2061 = vmatpush1.msra.mxu1 %v453_v1  ;;  %v449_v5 = vld [vmem:[#allocation5 + $0xd0] sm:$0xff]  ;;  %v448_v6 = vld [vmem:[#allocation5 + $0xc8] sm:$0xff]  ;;  %v447_v7 = vld [vmem:[#allocation5 + $0xc0] sm:$0xff]  ;;  %s1582_s20 = scalar_lea.sflag [#allocation4], %s2667_s8  ;;  %s3277_s10 = scalar_lea.sflag [#allocation12], %s1586_s21 }
  0x6c   : > { %489 = vmatprep.subr.mxu0 %v452_v2  ;;  %2030 = vmatprep.subr.mxu1 %v452_v2  ;;  %v446_v8 = vld [vmem:[#allocation5 + $0xb8] sm:$0xff]  ;;  %v445_v9 = vld [vmem:[#allocation5 + $0xb0] sm:$0xff]  ;;  %v444_v10 = vld [vmem:[#allocation5 + $0xa8] sm:$0xff] }
  0x6d   : > { %490 = vmatpush1.msra.mxu0 %v451_v3  ;;  %2062 = vmatpush1.msra.mxu1 %v451_v3  ;;  %v443_v11 = vld [vmem:[#allocation5 + $0xa0] sm:$0xff]  ;;  %v442_v12 = vld [vmem:[#allocation5 + $0x98] sm:$0xff]  ;;  %v441_v13 = vld [vmem:[#allocation5 + $0x90] sm:$0xff] }
  0x6e   : > { %491 = vmatprep.subr.mxu0 %v450_v4  ;;  %2031 = vmatprep.subr.mxu1 %v450_v4  ;;  %v440_v14 = vld [vmem:[#allocation5 + $0x88] sm:$0xff]  ;;  %v439_v15 = vld [vmem:[#allocation5 + $0x80] sm:$0xff]  ;;  %v438_v16 = vld [vmem:[#allocation5 + $0x78] sm:$0xff] }
  0x6f   : > { %492 = vmatpush1.msra.mxu0 %v449_v5  ;;  %2063 = vmatpush1.msra.mxu1 %v449_v5  ;;  %v437_v17 = vld [vmem:[#allocation5 + $0x70] sm:$0xff]  ;;  %v436_v18 = vld [vmem:[#allocation5 + $0x68] sm:$0xff]  ;;  %v435_v19 = vld [vmem:[#allocation5 + $0x60] sm:$0xff] }
  0x70   : > { %493 = vmatprep.subr.mxu0 %v448_v6  ;;  %2032 = vmatprep.subr.mxu1 %v448_v6  ;;  %v434_v20 = vld [vmem:[#allocation5 + $0x58] sm:$0xff]  ;;  %v433_v21 = vld [vmem:[#allocation5 + $0x50] sm:$0xff]  ;;  %v432_v22 = vld [vmem:[#allocation5 + $0x48] sm:$0xff] }
  0x71   : > { %494 = vmatpush1.msra.mxu0 %v447_v7  ;;  %2064 = vmatpush1.msra.mxu1 %v447_v7  ;;  %v431_v23 = vld [vmem:[#allocation5 + $0x40] sm:$0xff]  ;;  %v430_v24 = vld [vmem:[#allocation5 + $0x38] sm:$0xff]  ;;  %v429_v25 = vld [vmem:[#allocation5 + $0x30] sm:$0xff] }
  0x72   : > { %495 = vmatprep.subr.mxu0 %v446_v8  ;;  %2033 = vmatprep.subr.mxu1 %v446_v8  ;;  %v428_v26 = vld [vmem:[#allocation5 + $0x28] sm:$0xff]  ;;  %v427_v27 = vld [vmem:[#allocation5 + $0x20] sm:$0xff]  ;;  %v426_v28 = vld [vmem:[#allocation5 + $0x18] sm:$0xff] }
  0x73   : > { %496 = vmatpush1.msra.mxu0 %v445_v9  ;;  %2065 = vmatpush1.msra.mxu1 %v445_v9  ;;  %v425_v29 = vld [vmem:[#allocation5 + $0x10] sm:$0xff]  ;;  %v424_v30 = vld [vmem:[#allocation5 + $0x8] sm:$0xff]  ;;  %v423_v31 = vld [vmem:[#allocation5] sm:$0xff] }
  0x74   : > { %497 = vmatprep.subr.mxu0 %v444_v10  ;;  %2034 = vmatprep.subr.mxu1 %v444_v10  ;;  %v486_v32 = vld [vmem:[#allocation5 + $0x1f8] sm:$0xff]  ;;  %v485_v33 = vld [vmem:[#allocation5 + $0x1f0] sm:$0xff]  ;;  %v484_v34 = vld [vmem:[#allocation5 + $0x1e8] sm:$0xff] }
  0x75   : > { %498 = vmatpush1.msra.mxu0 %v443_v11  ;;  %2066 = vmatpush1.msra.mxu1 %v443_v11  ;;  %v483_v35 = vld [vmem:[#allocation5 + $0x1e0] sm:$0xff]  ;;  %v482_v36 = vld [vmem:[#allocation5 + $0x1d8] sm:$0xff]  ;;  %v481_v37 = vld [vmem:[#allocation5 + $0x1d0] sm:$0xff] }
  0x76   : > { %499 = vmatprep.subr.mxu0 %v442_v12  ;;  %2035 = vmatprep.subr.mxu1 %v442_v12  ;;  %v480_v38 = vld [vmem:[#allocation5 + $0x1c8] sm:$0xff]  ;;  %v479_v39 = vld [vmem:[#allocation5 + $0x1c0] sm:$0xff]  ;;  %v478_v40 = vld [vmem:[#allocation5 + $0x1b8] sm:$0xff] }
  0x77   : > { %500 = vmatpush1.msra.mxu0 %v441_v13  ;;  %2067 = vmatpush1.msra.mxu1 %v441_v13  ;;  %v477_v41 = vld [vmem:[#allocation5 + $0x1b0] sm:$0xff]  ;;  %v476_v42 = vld [vmem:[#allocation5 + $0x1a8] sm:$0xff]  ;;  %v475_v43 = vld [vmem:[#allocation5 + $0x1a0] sm:$0xff] }
  0x78   : > { %501 = vmatprep.subr.mxu0 %v440_v14  ;;  %2036 = vmatprep.subr.mxu1 %v440_v14  ;;  %v474_v44 = vld [vmem:[#allocation5 + $0x198] sm:$0xff]  ;;  %v473_v45 = vld [vmem:[#allocation5 + $0x190] sm:$0xff]  ;;  %v472_v46 = vld [vmem:[#allocation5 + $0x188] sm:$0xff] }
  0x79   : > { %502 = vmatpush1.msra.mxu0 %v439_v15  ;;  %2068 = vmatpush1.msra.mxu1 %v439_v15  ;;  %v471_v47 = vld [vmem:[#allocation5 + $0x180] sm:$0xff]  ;;  %v470_v48 = vld [vmem:[#allocation5 + $0x178] sm:$0xff]  ;;  %v469_v49 = vld [vmem:[#allocation5 + $0x170] sm:$0xff] }
  0x7a   : > { %503 = vmatprep.subr.mxu0 %v438_v16  ;;  %2037 = vmatprep.subr.mxu1 %v438_v16  ;;  %v468_v50 = vld [vmem:[#allocation5 + $0x168] sm:$0xff]  ;;  %v467_v51 = vld [vmem:[#allocation5 + $0x160] sm:$0xff]  ;;  %v466_v52 = vld [vmem:[#allocation5 + $0x158] sm:$0xff] }
  0x7b   : > { %504 = vmatpush1.msra.mxu0 %v437_v17  ;;  %2069 = vmatpush1.msra.mxu1 %v437_v17  ;;  %v465_v53 = vld [vmem:[#allocation5 + $0x150] sm:$0xff]  ;;  %v464_v54 = vld [vmem:[#allocation5 + $0x148] sm:$0xff]  ;;  %v463_v55 = vld [vmem:[#allocation5 + $0x140] sm:$0xff] }
  0x7c   : > { %505 = vmatprep.subr.mxu0 %v436_v18  ;;  %2038 = vmatprep.subr.mxu1 %v436_v18  ;;  %v462_v56 = vld [vmem:[#allocation5 + $0x138] sm:$0xff]  ;;  %v461_v57 = vld [vmem:[#allocation5 + $0x130] sm:$0xff]  ;;  %v460_v58 = vld [vmem:[#allocation5 + $0x128] sm:$0xff] }
  0x7d   : > { %506 = vmatpush1.msra.mxu0 %v435_v19  ;;  %2070 = vmatpush1.msra.mxu1 %v435_v19  ;;  %v459_v59 = vld [vmem:[#allocation5 + $0x120] sm:$0xff]  ;;  %v458_v60 = vld [vmem:[#allocation5 + $0x118] sm:$0xff]  ;;  %v457_v61 = vld [vmem:[#allocation5 + $0x110] sm:$0xff] }
  0x7e   : > { %507 = vmatprep.subr.mxu0 %v434_v20  ;;  %2039 = vmatprep.subr.mxu1 %v434_v20  ;;  %v456_v62 = vld [vmem:[#allocation5 + $0x108] sm:$0xff]  ;;  %v455_v63 = vld [vmem:[#allocation5 + $0x100] sm:$0xff]  ;;  %v775_v4 = vld [vmem:[#allocation7 + $0xf8] sm:$0xff] }
  0x7f   : > { %508 = vmatpush1.msra.mxu0 %v433_v21  ;;  %2071 = vmatpush1.msra.mxu1 %v433_v21  ;;  %v2689_v0 = vld [vmem:[%s2674_s11 + $0x8] sm:$0xff]  ;;  %v2695_v2 = vld [vmem:[%s2674_s11] sm:$0xff]  ;;  %v1096_v5 = vld [vmem:[#allocation8 + $0xf8] sm:$0xff] }
  0x80   : > { %509 = vmatprep.subr.mxu0 %v432_v22  ;;  %2040 = vmatprep.subr.mxu1 %v432_v22  ;;  %v2692_v1 = vld [vmem:[%s2674_s11 + $0x108] sm:$0xff]  ;;  %v2698_v3 = vld [vmem:[%s2674_s11 + $0x100] sm:$0xff]  ;;  %v774_v6 = vld [vmem:[#allocation7 + $0xf0] sm:$0xff] }
  0x81   : > { %510 = vmatpush1.msra.mxu0 %v431_v23  ;;  %2072 = vmatpush1.msra.mxu1 %v431_v23  ;;  %v1095_v7 = vld [vmem:[#allocation8 + $0xf0] sm:$0xff]  ;;  %v773_v8 = vld [vmem:[#allocation7 + $0xe8] sm:$0xff]  ;;  %v2705_v10 = vld [vmem:[%s2674_s11 + $0x18] sm:$0xff] }
  0x82   : > { %511 = vmatprep.subr.mxu0 %v430_v24  ;;  %2041 = vmatprep.subr.mxu1 %v430_v24  ;;  %v1094_v9 = vld [vmem:[#allocation8 + $0xe8] sm:$0xff]  ;;  %v2708_v11 = vld [vmem:[%s2674_s11 + $0x118] sm:$0xff]  ;;  %v772_v12 = vld [vmem:[#allocation7 + $0xe0] sm:$0xff] }
  0x83   : > { %512 = vmatpush1.msra.mxu0 %v429_v25  ;;  %2073 = vmatpush1.msra.mxu1 %v429_v25  ;;  %v1093_v13 = vld [vmem:[#allocation8 + $0xe0] sm:$0xff]  ;;  %v2711_v14 = vld [vmem:[%s2674_s11 + $0x10] sm:$0xff]  ;;  %v771_v16 = vld [vmem:[#allocation7 + $0xd8] sm:$0xff] }
  0x84   : > { %513 = vmatprep.subr.mxu0 %v428_v26  ;;  %2042 = vmatprep.subr.mxu1 %v428_v26  ;;  %v2714_v15 = vld [vmem:[%s2674_s11 + $0x110] sm:$0xff]  ;;  %v1092_v17 = vld [vmem:[#allocation8 + $0xd8] sm:$0xff]  ;;  %v769_v20 = vld [vmem:[#allocation7 + $0xc8] sm:$0xff] }
  0x85   : > { %514 = vmatpush1.msra.mxu0 %v427_v27  ;;  %2074 = vmatpush1.msra.mxu1 %v427_v27  ;;  %v770_v18 = vld [vmem:[#allocation7 + $0xd0] sm:$0xff]  ;;  %v1090_v21 = vld [vmem:[#allocation8 + $0xc8] sm:$0xff]  ;;  %v768_v24 = vld [vmem:[#allocation7 + $0xc0] sm:$0xff] }
  0x86   : > { %515 = vmatprep.subr.mxu0 %v426_v28  ;;  %2043 = vmatprep.subr.mxu1 %v426_v28  ;;  %v1091_v19 = vld [vmem:[#allocation8 + $0xd0] sm:$0xff]  ;;  %v2721_v22 = vld [vmem:[%s2674_s11 + $0x28] sm:$0xff]  ;;  %v1089_v25 = vld [vmem:[#allocation8 + $0xc0] sm:$0xff] }
  0x87   : > { %516 = vmatpush1.msra.mxu0 %v425_v29  ;;  %2075 = vmatpush1.msra.mxu1 %v425_v29  ;;  %v2724_v23 = vld [vmem:[%s2674_s11 + $0x128] sm:$0xff]  ;;  %v2727_v26 = vld [vmem:[%s2674_s11 + $0x20] sm:$0xff]  ;;  %v767_v28 = vld [vmem:[#allocation7 + $0xb8] sm:$0xff] }
  0x88   : > { %517 = vmatprep.subr.mxu0 %v424_v30  ;;  %2044 = vmatprep.subr.mxu1 %v424_v30  ;;  %v2730_v27 = vld [vmem:[%s2674_s11 + $0x120] sm:$0xff]  ;;  %v1088_v29 = vld [vmem:[#allocation8 + $0xb8] sm:$0xff]  ;;  %v766_v30 = vld [vmem:[#allocation7 + $0xb0] sm:$0xff] }
  0x89   : > { %518 = vmatpush1.msra.mxu0 %v423_v31  ;;  %2076 = vmatpush1.msra.mxu1 %v423_v31  ;;  %v1087_v31 = vld [vmem:[#allocation8 + $0xb0] sm:$0xff] }
  0x8a   : > { %519 = vmatprep.subr.mxu0 %v486_v32  ;;  %2045 = vmatprep.subr.mxu1 %v486_v32  ;;  %v765_v32 = vld [vmem:[#allocation7 + $0xa8] sm:$0xff] }
  0x8b   : > { %520 = vmatpush2.msra.mxu0 %v485_v33  ;;  %2077 = vmatpush2.msra.mxu1 %v485_v33  ;;  %v1086_v33 = vld [vmem:[#allocation8 + $0xa8] sm:$0xff] }
  0x8c   : > { %521 = vmatprep.subr.mxu0 %v484_v34  ;;  %2046 = vmatprep.subr.mxu1 %v484_v34  ;;  %v2737_v34 = vld [vmem:[%s2674_s11 + $0x38] sm:$0xff] }
  0x8d   : > { %522 = vmatpush2.msra.mxu0 %v483_v35  ;;  %2078 = vmatpush2.msra.mxu1 %v483_v35  ;;  %v2740_v35 = vld [vmem:[%s2674_s11 + $0x138] sm:$0xff] }
  0x8e   : > { %523 = vmatprep.subr.mxu0 %v482_v36  ;;  %2047 = vmatprep.subr.mxu1 %v482_v36  ;;  %v764_v36 = vld [vmem:[#allocation7 + $0xa0] sm:$0xff] }
  0x8f   : > { %524 = vmatpush2.msra.mxu0 %v481_v37  ;;  %2079 = vmatpush2.msra.mxu1 %v481_v37  ;;  %v1085_v37 = vld [vmem:[#allocation8 + $0xa0] sm:$0xff] }
  0x90   : > { %525 = vmatprep.subr.mxu0 %v480_v38  ;;  %2048 = vmatprep.subr.mxu1 %v480_v38  ;;  %v2743_v38 = vld [vmem:[%s2674_s11 + $0x30] sm:$0xff] }
  0x91   : > { %526 = vmatpush2.msra.mxu0 %v479_v39  ;;  %2080 = vmatpush2.msra.mxu1 %v479_v39  ;;  %v2746_v39 = vld [vmem:[%s2674_s11 + $0x130] sm:$0xff] }
  0x92   : > { %527 = vmatprep.subr.mxu0 %v478_v40  ;;  %2049 = vmatprep.subr.mxu1 %v478_v40  ;;  %v763_v40 = vld [vmem:[#allocation7 + $0x98] sm:$0xff] }
  0x93   : > { %528 = vmatpush2.msra.mxu0 %v477_v41  ;;  %2081 = vmatpush2.msra.mxu1 %v477_v41  ;;  %v1084_v41 = vld [vmem:[#allocation8 + $0x98] sm:$0xff] }
  0x94   : > { %529 = vmatprep.subr.mxu0 %v476_v42  ;;  %2050 = vmatprep.subr.mxu1 %v476_v42  ;;  %v762_v42 = vld [vmem:[#allocation7 + $0x90] sm:$0xff] }
  0x95   : > { %530 = vmatpush2.msra.mxu0 %v475_v43  ;;  %2082 = vmatpush2.msra.mxu1 %v475_v43  ;;  %v1083_v43 = vld [vmem:[#allocation8 + $0x90] sm:$0xff] }
  0x96   : > { %531 = vmatprep.subr.mxu0 %v474_v44  ;;  %2051 = vmatprep.subr.mxu1 %v474_v44  ;;  %v761_v44 = vld [vmem:[#allocation7 + $0x88] sm:$0xff] }
  0x97   : > { %532 = vmatpush2.msra.mxu0 %v473_v45  ;;  %2083 = vmatpush2.msra.mxu1 %v473_v45  ;;  %v1082_v45 = vld [vmem:[#allocation8 + $0x88] sm:$0xff] }
  0x98   : > { %533 = vmatprep.subr.mxu0 %v472_v46  ;;  %2052 = vmatprep.subr.mxu1 %v472_v46  ;;  %v2753_v46 = vld [vmem:[%s2674_s11 + $0x48] sm:$0xff] }
  0x99   : > { %534 = vmatpush2.msra.mxu0 %v471_v47  ;;  %2084 = vmatpush2.msra.mxu1 %v471_v47  ;;  %v2756_v47 = vld [vmem:[%s2674_s11 + $0x148] sm:$0xff] }
  0x9a   : > { %535 = vmatprep.subr.mxu0 %v470_v48  ;;  %2053 = vmatprep.subr.mxu1 %v470_v48  ;;  %v760_v48 = vld [vmem:[#allocation7 + $0x80] sm:$0xff] }
  0x9b   : > { %536 = vmatpush2.msra.mxu0 %v469_v49  ;;  %2085 = vmatpush2.msra.mxu1 %v469_v49  ;;  %v1081_v49 = vld [vmem:[#allocation8 + $0x80] sm:$0xff] }
  0x9c   : > { %537 = vmatprep.subr.mxu0 %v468_v50  ;;  %2054 = vmatprep.subr.mxu1 %v468_v50  ;;  %v2759_v50 = vld [vmem:[%s2674_s11 + $0x40] sm:$0xff] }
  0x9d   : > { %538 = vmatpush2.msra.mxu0 %v467_v51  ;;  %2086 = vmatpush2.msra.mxu1 %v467_v51  ;;  %v2762_v51 = vld [vmem:[%s2674_s11 + $0x140] sm:$0xff] }
  0x9e   : > { %539 = vmatprep.subr.mxu0 %v466_v52  ;;  %2055 = vmatprep.subr.mxu1 %v466_v52  ;;  %v759_v52 = vld [vmem:[#allocation7 + $0x78] sm:$0xff] }
  0x9f   : > { %540 = vmatpush2.msra.mxu0 %v465_v53  ;;  %2087 = vmatpush2.msra.mxu1 %v465_v53  ;;  %v1080_v53 = vld [vmem:[#allocation8 + $0x78] sm:$0xff] }
  0xa0   : > { %541 = vmatprep.subr.mxu0 %v464_v54  ;;  %2056 = vmatprep.subr.mxu1 %v464_v54  ;;  %v758_v54 = vld [vmem:[#allocation7 + $0x70] sm:$0xff] }
  0xa1   : > { %542 = vmatpush2.msra.mxu0 %v463_v55  ;;  %2088 = vmatpush2.msra.mxu1 %v463_v55  ;;  %v1079_v55 = vld [vmem:[#allocation8 + $0x70] sm:$0xff] }
  0xa2   : > { %543 = vmatprep.subr.mxu0 %v462_v56  ;;  %2057 = vmatprep.subr.mxu1 %v462_v56  ;;  %v757_v56 = vld [vmem:[#allocation7 + $0x68] sm:$0xff] }
  0xa3   : > { %544 = vmatpush2.msra.mxu0 %v461_v57  ;;  %2089 = vmatpush2.msra.mxu1 %v461_v57  ;;  %v1078_v57 = vld [vmem:[#allocation8 + $0x68] sm:$0xff] }
  0xa4   : > { %545 = vmatprep.subr.mxu0 %v460_v58  ;;  %2058 = vmatprep.subr.mxu1 %v460_v58  ;;  %v2769_v58 = vld [vmem:[%s2674_s11 + $0x58] sm:$0xff] }
  0xa5   : > { %546 = vmatpush2.msra.mxu0 %v459_v59  ;;  %2090 = vmatpush2.msra.mxu1 %v459_v59  ;;  %v2772_v59 = vld [vmem:[%s2674_s11 + $0x158] sm:$0xff] }
  0xa6   : > { %547 = vmatprep.subr.mxu0 %v458_v60  ;;  %2059 = vmatprep.subr.mxu1 %v458_v60  ;;  %v756_v60 = vld [vmem:[#allocation7 + $0x60] sm:$0xff] }
  0xa7   : > { %548 = vmatpush2.msra.mxu0 %v457_v61  ;;  %2091 = vmatpush2.msra.mxu1 %v457_v61  ;;  %v1077_v61 = vld [vmem:[#allocation8 + $0x60] sm:$0xff] }
  0xa8   : > { %549 = vmatprep.subr.mxu0 %v456_v62  ;;  %2060 = vmatprep.subr.mxu1 %v456_v62  ;;  %v2775_v62 = vld [vmem:[%s2674_s11 + $0x50] sm:$0xff] }
  0xa9   : > { %550 = vmatpush2.msra.mxu0 %v455_v63  ;;  %2092 = vmatpush2.msra.mxu1 %v455_v63  ;;  %v2778_v63 = vld [vmem:[%s2674_s11 + $0x150] sm:$0xff] }
  0xaa   : > { %551 = vmatprep.mubr.f32.mxu0 %v2689_v0  ;;  %647 = vmatprep.mubr.f32.mxu1 %v2692_v1 }
  0xab   : > { %552 = vmatmul.mubr.f32.vlgmr.msra.gmra.mxu0 %v2695_v2  ;;  %648 = vmatmul.mubr.f32.vlgmr.msra.gmra.mxu1 %v2698_v3 }
  0xac   : > { %808 = vmatprep.subr.mxu1 %v775_v4  ;;  %1129 = vmatprep.subr.mxu0 %v1096_v5  ;;  %v755_v4 = vld [vmem:[#allocation7 + $0x58] sm:$0xff] }
  0xad   : > { %809 = vmatpush1.msra.mxu1 %v774_v6  ;;  %1130 = vmatpush1.msra.mxu0 %v1095_v7  ;;  %v1076_v5 = vld [vmem:[#allocation8 + $0x58] sm:$0xff]  ;;  %v754_v6 = vld [vmem:[#allocation7 + $0x50] sm:$0xff] }
  0xae   : > { %810 = vmatprep.subr.mxu1 %v773_v8  ;;  %1131 = vmatprep.subr.mxu0 %v1094_v9  ;;  %v1075_v7 = vld [vmem:[#allocation8 + $0x50] sm:$0xff]  ;;  %v753_v8 = vld [vmem:[#allocation7 + $0x48] sm:$0xff] }
  0xaf   : > { %557 = vmatprep.mubr.f32.mxu0 %v2705_v10  ;;  %653 = vmatprep.mubr.f32.mxu1 %v2708_v11  ;;  %v1074_v9 = vld [vmem:[#allocation8 + $0x48] sm:$0xff] }
  0xb0   : > { %811 = vmatpush1.msra.mxu1 %v772_v12  ;;  %1132 = vmatpush1.msra.mxu0 %v1093_v13  ;;  %v2785_v12 = vld [vmem:[%s2674_s11 + $0x68] sm:$0xff] }
  0xb1   : > { %558 = vmatmul.mubr.f32.gmra.mxu0 %v2711_v14  ;;  %654 = vmatmul.mubr.f32.gmra.mxu1 %v2714_v15  ;;  %v2788_v13 = vld [vmem:[%s2674_s11 + $0x168] sm:$0xff] }
  0xb2   : > { %812 = vmatprep.subr.mxu1 %v771_v16  ;;  %1133 = vmatprep.subr.mxu0 %v1092_v17  ;;  %v752_v16 = vld [vmem:[#allocation7 + $0x40] sm:$0xff] }
  0xb3   : > { %813 = vmatpush1.msra.mxu1 %v770_v18  ;;  %1134 = vmatpush1.msra.mxu0 %v1091_v19  ;;  %v1073_v17 = vld [vmem:[#allocation8 + $0x40] sm:$0xff] }
  0xb4   : > { %814 = vmatprep.subr.mxu1 %v769_v20  ;;  %1135 = vmatprep.subr.mxu0 %v1090_v21  ;;  %v2791_v18 = vld [vmem:[%s2674_s11 + $0x60] sm:$0xff]  ;;  %v751_v20 = vld [vmem:[#allocation7 + $0x38] sm:$0xff] }
  0xb5   : > { %563 = vmatprep.mubr.f32.mxu0 %v2721_v22  ;;  %659 = vmatprep.mubr.f32.mxu1 %v2724_v23  ;;  %v2794_v19 = vld [vmem:[%s2674_s11 + $0x160] sm:$0xff]  ;;  %v1072_v21 = vld [vmem:[#allocation8 + $0x38] sm:$0xff] }
  0xb6   : > { %815 = vmatpush1.msra.mxu1 %v768_v24  ;;  %1136 = vmatpush1.msra.mxu0 %v1089_v25  ;;  %v750_v24 = vld [vmem:[#allocation7 + $0x30] sm:$0xff] }
  0xb7   : > { %564 = vmatmul.mubr.f32.gmra.mxu0 %v2727_v26  ;;  %660 = vmatmul.mubr.f32.gmra.mxu1 %v2730_v27  ;;  %v1071_v25 = vld [vmem:[#allocation8 + $0x30] sm:$0xff] }
  0xb8   : > { %816 = vmatprep.subr.mxu1 %v767_v28  ;;  %1137 = vmatprep.subr.mxu0 %v1088_v29  ;;  %v749_v28 = vld [vmem:[#allocation7 + $0x28] sm:$0xff] }
  0xb9   : > { %817 = vmatpush1.msra.mxu1 %v766_v30  ;;  %1138 = vmatpush1.msra.mxu0 %v1087_v31  ;;  %v1070_v29 = vld [vmem:[#allocation8 + $0x28] sm:$0xff]  ;;  %v2801_v30 = vld [vmem:[%s2674_s11 + $0x78] sm:$0xff] }
  0xba   : > { %818 = vmatprep.subr.mxu1 %v765_v32  ;;  %1139 = vmatprep.subr.mxu0 %v1086_v33  ;;  %v2804_v31 = vld [vmem:[%s2674_s11 + $0x178] sm:$0xff]  ;;  %v748_v32 = vld [vmem:[#allocation7 + $0x20] sm:$0xff] }
  0xbb   : > { %569 = vmatprep.mubr.f32.mxu0 %v2737_v34  ;;  %665 = vmatprep.mubr.f32.mxu1 %v2740_v35  ;;  %v1069_v33 = vld [vmem:[#allocation8 + $0x20] sm:$0xff] }
  0xbc   : > { %819 = vmatpush1.msra.mxu1 %v764_v36  ;;  %1140 = vmatpush1.msra.mxu0 %v1085_v37  ;;  %v2807_v36 = vld [vmem:[%s2674_s11 + $0x70] sm:$0xff] }
  0xbd   : > { %570 = vmatmul.mubr.f32.gmra.mxu0 %v2743_v38  ;;  %666 = vmatmul.mubr.f32.gmra.mxu1 %v2746_v39  ;;  %v2810_v37 = vld [vmem:[%s2674_s11 + $0x170] sm:$0xff] }
  0xbe   : > { %820 = vmatprep.subr.mxu1 %v763_v40  ;;  %1141 = vmatprep.subr.mxu0 %v1084_v41  ;;  %v747_v40 = vld [vmem:[#allocation7 + $0x18] sm:$0xff] }
  0xbf   : > { %821 = vmatpush1.msra.mxu1 %v762_v42  ;;  %1142 = vmatpush1.msra.mxu0 %v1083_v43  ;;  %v1068_v41 = vld [vmem:[#allocation8 + $0x18] sm:$0xff]  ;;  %v746_v42 = vld [vmem:[#allocation7 + $0x10] sm:$0xff] }
  0xc0   : > { %822 = vmatprep.subr.mxu1 %v761_v44  ;;  %1143 = vmatprep.subr.mxu0 %v1082_v45  ;;  %v1067_v43 = vld [vmem:[#allocation8 + $0x10] sm:$0xff]  ;;  %v745_v44 = vld [vmem:[#allocation7 + $0x8] sm:$0xff] }
  0xc1   : > { %575 = vmatprep.mubr.f32.mxu0 %v2753_v46  ;;  %671 = vmatprep.mubr.f32.mxu1 %v2756_v47  ;;  %v1066_v45 = vld [vmem:[#allocation8 + $0x8] sm:$0xff] }
  0xc2   : > { %823 = vmatpush1.msra.mxu1 %v760_v48  ;;  %1144 = vmatpush1.msra.mxu0 %v1081_v49  ;;  %v2817_v48 = vld [vmem:[%s2674_s11 + $0x88] sm:$0xff] }
  0xc3   : > { %576 = vmatmul.mubr.f32.gmra.mxu0 %v2759_v50  ;;  %672 = vmatmul.mubr.f32.gmra.mxu1 %v2762_v51  ;;  %v2820_v49 = vld [vmem:[%s2674_s11 + $0x188] sm:$0xff] }
  0xc4   : > { %824 = vmatprep.subr.mxu1 %v759_v52  ;;  %1145 = vmatprep.subr.mxu0 %v1080_v53  ;;  %v744_v52 = vld [vmem:[#allocation7] sm:$0xff] }
  0xc5   : > { %825 = vmatpush1.msra.mxu1 %v758_v54  ;;  %1146 = vmatpush1.msra.mxu0 %v1079_v55  ;;  %v1065_v53 = vld [vmem:[#allocation8] sm:$0xff] }
  0xc6   : > { %826 = vmatprep.subr.mxu1 %v757_v56  ;;  %1147 = vmatprep.subr.mxu0 %v1078_v57  ;;  %v2823_v54 = vld [vmem:[%s2674_s11 + $0x80] sm:$0xff]  ;;  %v807_v56 = vld [vmem:[#allocation7 + $0x1f8] sm:$0xff] }
  0xc7   : > { %581 = vmatprep.mubr.f32.mxu0 %v2769_v58  ;;  %677 = vmatprep.mubr.f32.mxu1 %v2772_v59  ;;  %v2826_v55 = vld [vmem:[%s2674_s11 + $0x180] sm:$0xff]  ;;  %v1128_v57 = vld [vmem:[#allocation8 + $0x1f8] sm:$0xff] }
  0xc8   : > { %827 = vmatpush1.msra.mxu1 %v756_v60  ;;  %1148 = vmatpush1.msra.mxu0 %v1077_v61  ;;  %v806_v60 = vld [vmem:[#allocation7 + $0x1f0] sm:$0xff] }
  0xc9   : > { %582 = vmatmul.mubr.f32.gmra.mxu0 %v2775_v62  ;;  %678 = vmatmul.mubr.f32.gmra.mxu1 %v2778_v63  ;;  %v1127_v61 = vld [vmem:[#allocation8 + $0x1f0] sm:$0xff] }
  0xca   : > { %828 = vmatprep.subr.mxu1 %v755_v4  ;;  %1149 = vmatprep.subr.mxu0 %v1076_v5  ;;  %v805_v4 = vld [vmem:[#allocation7 + $0x1e8] sm:$0xff] }
  0xcb   : > { %829 = vmatpush1.msra.mxu1 %v754_v6  ;;  %1150 = vmatpush1.msra.mxu0 %v1075_v7  ;;  %v1126_v5 = vld [vmem:[#allocation8 + $0x1e8] sm:$0xff]  ;;  %v2833_v6 = vld [vmem:[%s2674_s11 + $0x98] sm:$0xff] }
  0xcc   : > { %830 = vmatprep.subr.mxu1 %v753_v8  ;;  %1151 = vmatprep.subr.mxu0 %v1074_v9  ;;  %v2836_v7 = vld [vmem:[%s2674_s11 + $0x198] sm:$0xff]  ;;  %v804_v8 = vld [vmem:[#allocation7 + $0x1e0] sm:$0xff] }
  0xcd   : > { %587 = vmatprep.mubr.f32.mxu0 %v2785_v12  ;;  %683 = vmatprep.mubr.f32.mxu1 %v2788_v13  ;;  %v1125_v9 = vld [vmem:[#allocation8 + $0x1e0] sm:$0xff] }
  0xce   : > { %831 = vmatpush1.msra.mxu1 %v752_v16  ;;  %1152 = vmatpush1.msra.mxu0 %v1073_v17  ;;  %v2839_v16 = vld [vmem:[%s2674_s11 + $0x90] sm:$0xff] }
  0xcf   : > { %588 = vmatmul.mubr.f32.gmra.mxu0 %v2791_v18  ;;  %684 = vmatmul.mubr.f32.gmra.mxu1 %v2794_v19  ;;  %v2842_v17 = vld [vmem:[%s2674_s11 + $0x190] sm:$0xff] }
  0xd0   : > { %832 = vmatprep.subr.mxu1 %v751_v20  ;;  %1153 = vmatprep.subr.mxu0 %v1072_v21  ;;  %v803_v20 = vld [vmem:[#allocation7 + $0x1d8] sm:$0xff] }
  0xd1   : > { %833 = vmatpush1.msra.mxu1 %v750_v24  ;;  %1154 = vmatpush1.msra.mxu0 %v1071_v25  ;;  %v1124_v21 = vld [vmem:[#allocation8 + $0x1d8] sm:$0xff]  ;;  %v802_v24 = vld [vmem:[#allocation7 + $0x1d0] sm:$0xff] }
  0xd2   : > { %834 = vmatprep.subr.mxu1 %v749_v28  ;;  %1155 = vmatprep.subr.mxu0 %v1070_v29  ;;  %v1123_v25 = vld [vmem:[#allocation8 + $0x1d0] sm:$0xff]  ;;  %v801_v28 = vld [vmem:[#allocation7 + $0x1c8] sm:$0xff] }
  0xd3   : > { %593 = vmatprep.mubr.f32.mxu0 %v2801_v30  ;;  %689 = vmatprep.mubr.f32.mxu1 %v2804_v31  ;;  %v1122_v29 = vld [vmem:[#allocation8 + $0x1c8] sm:$0xff] }
  0xd4   : > { %835 = vmatpush1.msra.mxu1 %v748_v32  ;;  %1156 = vmatpush1.msra.mxu0 %v1069_v33  ;;  %v2849_v32 = vld [vmem:[%s2674_s11 + $0xa8] sm:$0xff] }
  0xd5   : > { %594 = vmatmul.mubr.f32.gmra.mxu0 %v2807_v36  ;;  %690 = vmatmul.mubr.f32.gmra.mxu1 %v2810_v37  ;;  %v2852_v33 = vld [vmem:[%s2674_s11 + $0x1a8] sm:$0xff] }
  0xd6   : > { %836 = vmatprep.subr.mxu1 %v747_v40  ;;  %1157 = vmatprep.subr.mxu0 %v1068_v41  ;;  %3431 = vst [vmem:[#allocation29_spill] sm:$0xff] %v2852_v33  ;;  %v800_v40 = vld [vmem:[#allocation7 + $0x1c0] sm:$0xff] }
  0xd7   : > { %837 = vmatpush1.msra.mxu1 %v746_v42  ;;  %1158 = vmatpush1.msra.mxu0 %v1067_v43  ;;  %v1121_v41 = vld [vmem:[#allocation8 + $0x1c0] sm:$0xff] }
  0xd8   : > { %838 = vmatprep.subr.mxu1 %v745_v44  ;;  %1159 = vmatprep.subr.mxu0 %v1066_v45  ;;  %v2855_v42 = vld [vmem:[%s2674_s11 + $0xa0] sm:$0xff]  ;;  %v799_v44 = vld [vmem:[#allocation7 + $0x1b8] sm:$0xff] }
  0xd9   : > { %599 = vmatprep.mubr.f32.mxu0 %v2817_v48  ;;  %695 = vmatprep.mubr.f32.mxu1 %v2820_v49  ;;  %v2858_v43 = vld [vmem:[%s2674_s11 + $0x1a0] sm:$0xff]  ;;  %v1120_v45 = vld [vmem:[#allocation8 + $0x1b8] sm:$0xff] }
  0xda   : > { %839 = vmatpush1.msra.mxu1 %v744_v52  ;;  %1160 = vmatpush1.msra.mxu0 %v1065_v53  ;;  %3432 = vst [vmem:[#allocation30_spill] sm:$0xff] %v2858_v43  ;;  %v798_v52 = vld [vmem:[#allocation7 + $0x1b0] sm:$0xff] }
  0xdb   : > { %600 = vmatmul.mubr.f32.gmra.mxu0 %v2823_v54  ;;  %696 = vmatmul.mubr.f32.gmra.mxu1 %v2826_v55  ;;  %v1119_v53 = vld [vmem:[#allocation8 + $0x1b0] sm:$0xff] }
  0xdc   : > { %840 = vmatprep.subr.mxu1 %v807_v56  ;;  %1161 = vmatprep.subr.mxu0 %v1128_v57  ;;  %v797_v56 = vld [vmem:[#allocation7 + $0x1a8] sm:$0xff] }
  0xdd   : > { %841 = vmatpush2.msra.mxu1 %v806_v60  ;;  %1162 = vmatpush2.msra.mxu0 %v1127_v61  ;;  %v1118_v57 = vld [vmem:[#allocation8 + $0x1a8] sm:$0xff]  ;;  %v2865_v60 = vld [vmem:[%s2674_s11 + $0xb8] sm:$0xff] }
  0xde   : > { %842 = vmatprep.subr.mxu1 %v805_v4  ;;  %1163 = vmatprep.subr.mxu0 %v1126_v5  ;;  %v2868_v61 = vld [vmem:[%s2674_s11 + $0x1b8] sm:$0xff]  ;;  %v796_v4 = vld [vmem:[#allocation7 + $0x1a0] sm:$0xff] }
  0xdf   : > { %605 = vmatprep.mubr.f32.mxu0 %v2833_v6  ;;  %701 = vmatprep.mubr.f32.mxu1 %v2836_v7  ;;  %3433 = vst [vmem:[#allocation31_spill] sm:$0xff] %v2868_v61  ;;  %v1117_v5 = vld [vmem:[#allocation8 + $0x1a0] sm:$0xff] }
  0xe0   : > { %843 = vmatpush2.msra.mxu1 %v804_v8  ;;  %1164 = vmatpush2.msra.mxu0 %v1125_v9  ;;  %v2871_v8 = vld [vmem:[%s2674_s11 + $0xb0] sm:$0xff] }
  0xe1   : > { %606 = vmatmul.mubr.f32.gmra.mxu0 %v2839_v16  ;;  %702 = vmatmul.mubr.f32.gmra.mxu1 %v2842_v17  ;;  %v2874_v9 = vld [vmem:[%s2674_s11 + $0x1b0] sm:$0xff] }
  0xe2   : > { %844 = vmatprep.subr.mxu1 %v803_v20  ;;  %1165 = vmatprep.subr.mxu0 %v1124_v21  ;;  %3434 = vst [vmem:[#allocation32_spill] sm:$0xff] %v2874_v9  ;;  %v795_v20 = vld [vmem:[#allocation7 + $0x198] sm:$0xff] }
  0xe3   : > { %845 = vmatpush2.msra.mxu1 %v802_v24  ;;  %1166 = vmatpush2.msra.mxu0 %v1123_v25  ;;  %v1116_v21 = vld [vmem:[#allocation8 + $0x198] sm:$0xff]  ;;  %v794_v24 = vld [vmem:[#allocation7 + $0x190] sm:$0xff] }
  0xe4   : > { %846 = vmatprep.subr.mxu1 %v801_v28  ;;  %1167 = vmatprep.subr.mxu0 %v1122_v29  ;;  %v1115_v25 = vld [vmem:[#allocation8 + $0x190] sm:$0xff]  ;;  %v793_v28 = vld [vmem:[#allocation7 + $0x188] sm:$0xff] }
  0xe5   : > { %611 = vmatprep.mubr.f32.mxu0 %v2849_v32  ;;  %707 = vmatprep.mubr.f32.mxu1 %v2852_v33  ;;  %v1114_v29 = vld [vmem:[#allocation8 + $0x188] sm:$0xff]  ;;  %v1099_v33 = vld [vmem:[#allocation8 + $0x110] sm:$0xff] }
  0xe6   : > { %847 = vmatpush2.msra.mxu1 %v800_v40  ;;  %1168 = vmatpush2.msra.mxu0 %v1121_v41  ;;  %v2881_v40 = vld [vmem:[%s2674_s11 + $0xc8] sm:$0xff] }
  0xe7   : > { %612 = vmatmul.mubr.f32.gmra.mxu0 %v2855_v42  ;;  %708 = vmatmul.mubr.f32.gmra.mxu1 %v2858_v43  ;;  %v2884_v41 = vld [vmem:[%s2674_s11 + $0x1c8] sm:$0xff]  ;;  %v2938_v43 = vld [vmem:[%s2674_s11 + $0x1f0] sm:$0xff] }
  0xe8   : > { %848 = vmatprep.subr.mxu1 %v799_v44  ;;  %1169 = vmatprep.subr.mxu0 %v1120_v45  ;;  %3435 = vst [vmem:[#allocation33_spill] sm:$0xff] %v2884_v41  ;;  %v792_v44 = vld [vmem:[#allocation7 + $0x180] sm:$0xff] }
  0xe9   : > { %849 = vmatpush2.msra.mxu1 %v798_v52  ;;  %1170 = vmatpush2.msra.mxu0 %v1119_v53  ;;  %v1113_v45 = vld [vmem:[#allocation8 + $0x180] sm:$0xff] }
  0xea   : > { %850 = vmatprep.subr.mxu1 %v797_v56  ;;  %1171 = vmatprep.subr.mxu0 %v1118_v57  ;;  %v2887_v52 = vld [vmem:[%s2674_s11 + $0xc0] sm:$0xff]  ;;  %v791_v56 = vld [vmem:[#allocation7 + $0x178] sm:$0xff] }
  0xeb   : > { %617 = vmatprep.mubr.f32.mxu0 %v2865_v60  ;;  %713 = vmatprep.mubr.f32.mxu1 %v2868_v61  ;;  %v2890_v53 = vld [vmem:[%s2674_s11 + $0x1c0] sm:$0xff]  ;;  %v1112_v57 = vld [vmem:[#allocation8 + $0x178] sm:$0xff] }
  0xec   : > { %851 = vmatpush2.msra.mxu1 %v796_v4  ;;  %1172 = vmatpush2.msra.mxu0 %v1117_v5  ;;  %3436 = vst [vmem:[#allocation34_spill] sm:$0xff] %v2890_v53  ;;  %v790_v4 = vld [vmem:[#allocation7 + $0x170] sm:$0xff]  ;;  %v2932_v61 = vld [vmem:[%s2674_s11 + $0x1f8] sm:$0xff] }
  0xed   : > { %618 = vmatmul.mubr.f32.gmra.mxu0 %v2871_v8  ;;  %714 = vmatmul.mubr.f32.gmra.mxu1 %v2874_v9  ;;  %v1111_v5 = vld [vmem:[#allocation8 + $0x170] sm:$0xff]  ;;  %v2922_v9 = vld [vmem:[%s2674_s11 + $0x1e0] sm:$0xff] }
  0xee   : > { %852 = vmatprep.subr.mxu1 %v795_v20  ;;  %1173 = vmatprep.subr.mxu0 %v1116_v21  ;;  %v789_v20 = vld [vmem:[#allocation7 + $0x168] sm:$0xff]  ;;  %3440 = vst [vmem:[#allocation38_spill] sm:$0xff] %v2922_v9 }
  0xef   : > { %853 = vmatpush2.msra.mxu1 %v794_v24  ;;  %1174 = vmatpush2.msra.mxu0 %v1115_v25  ;;  %v1110_v21 = vld [vmem:[#allocation8 + $0x168] sm:$0xff]  ;;  %v2897_v24 = vld [vmem:[%s2674_s11 + $0xd8] sm:$0xff] }
  0xf0   : > { %854 = vmatprep.subr.mxu1 %v793_v28  ;;  %1175 = vmatprep.subr.mxu0 %v1114_v29  ;;  %v2900_v25 = vld [vmem:[%s2674_s11 + $0x1d8] sm:$0xff]  ;;  %v788_v28 = vld [vmem:[#allocation7 + $0x160] sm:$0xff] }
  0xf1   : > { %623 = vmatprep.mubr.f32.mxu0 %v2881_v40  ;;  %719 = vmatprep.mubr.f32.mxu1 %v2884_v41  ;;  %3437 = vst [vmem:[#allocation35_spill] sm:$0xff] %v2900_v25  ;;  %v1109_v29 = vld [vmem:[#allocation8 + $0x160] sm:$0xff]  ;;  %v2916_v41 = vld [vmem:[%s2674_s11 + $0x1e8] sm:$0xff] }
  0xf2   : > { %855 = vmatpush2.msra.mxu1 %v792_v44  ;;  %1176 = vmatpush2.msra.mxu0 %v1113_v45  ;;  %v2903_v44 = vld [vmem:[%s2674_s11 + $0xd0] sm:$0xff]  ;;  %3439 = vst [vmem:[#allocation37_spill] sm:$0xff] %v2916_v41 }
  0xf3   : > { %624 = vmatmul.mubr.f32.gmra.mxu0 %v2887_v52  ;;  %720 = vmatmul.mubr.f32.gmra.mxu1 %v2890_v53  ;;  %v2906_v45 = vld [vmem:[%s2674_s11 + $0x1d0] sm:$0xff]  ;;  %v2913_v53 = vld [vmem:[%s2674_s11 + $0xe8] sm:$0xff] }
  0xf4   : > { %856 = vmatprep.subr.mxu1 %v791_v56  ;;  %1177 = vmatprep.subr.mxu0 %v1112_v57  ;;  %3438 = vst [vmem:[#allocation36_spill] sm:$0xff] %v2906_v45  ;;  %v787_v56 = vld [vmem:[#allocation7 + $0x158] sm:$0xff] }
  0xf5   : > { %857 = vmatpush2.msra.mxu1 %v790_v4  ;;  %1178 = vmatpush2.msra.mxu0 %v1111_v5  ;;  %v1108_v57 = vld [vmem:[#allocation8 + $0x158] sm:$0xff]  ;;  %v786_v4 = vld [vmem:[#allocation7 + $0x150] sm:$0xff] }
  0xf6   : > { %858 = vmatprep.subr.mxu1 %v789_v20  ;;  %1179 = vmatprep.subr.mxu0 %v1110_v21  ;;  %v1107_v5 = vld [vmem:[#allocation8 + $0x150] sm:$0xff]  ;;  %v785_v20 = vld [vmem:[#allocation7 + $0x148] sm:$0xff] }
  0xf7   : > { %629 = vmatprep.mubr.f32.mxu0 %v2897_v24  ;;  %725 = vmatprep.mubr.f32.mxu1 %v2900_v25  ;;  %v1106_v21 = vld [vmem:[#allocation8 + $0x148] sm:$0xff]  ;;  %v2919_v25 = vld [vmem:[%s2674_s11 + $0xe0] sm:$0xff] }
  0xf8   : > { %859 = vmatpush2.msra.mxu1 %v788_v28  ;;  %1180 = vmatpush2.msra.mxu0 %v1109_v29  ;;  %v784_v28 = vld [vmem:[#allocation7 + $0x140] sm:$0xff] }
  0xf9   : > { %630 = vmatmul.mubr.f32.gmra.mxu0 %v2903_v44  ;;  %726 = vmatmul.mubr.f32.gmra.mxu1 %v2906_v45  ;;  %v1105_v29 = vld [vmem:[#allocation8 + $0x140] sm:$0xff]  ;;  %v2929_v45 = vld [vmem:[%s2674_s11 + $0xf8] sm:$0xff] }
  0xfa   : > { %860 = vmatprep.subr.mxu1 %v787_v56  ;;  %1181 = vmatprep.subr.mxu0 %v1108_v57  ;;  %v783_v56 = vld [vmem:[#allocation7 + $0x138] sm:$0xff] }
  0xfb   : > { %861 = vmatpush2.msra.mxu1 %v786_v4  ;;  %1182 = vmatpush2.msra.mxu0 %v1107_v5  ;;  %v1104_v57 = vld [vmem:[#allocation8 + $0x138] sm:$0xff]  ;;  %v782_v4 = vld [vmem:[#allocation7 + $0x130] sm:$0xff] }
  0xfc   : > { %862 = vmatprep.subr.mxu1 %v785_v20  ;;  %1183 = vmatprep.subr.mxu0 %v1106_v21  ;;  %v1103_v5 = vld [vmem:[#allocation8 + $0x130] sm:$0xff]  ;;  %v781_v20 = vld [vmem:[#allocation7 + $0x128] sm:$0xff] }
  0xfd   : > { %635 = vmatprep.mubr.f32.mxu0 %v2913_v53  ;;  %731 = vmatprep.mubr.f32.mxu1 %v2916_v41  ;;  %v1102_v21 = vld [vmem:[#allocation8 + $0x128] sm:$0xff]  ;;  %v2935_v41 = vld [vmem:[%s2674_s11 + $0xf0] sm:$0xff] }
  0xfe   : > { %863 = vmatpush2.msra.mxu1 %v784_v28  ;;  %1184 = vmatpush2.msra.mxu0 %v1105_v29  ;;  %v780_v28 = vld [vmem:[#allocation7 + $0x120] sm:$0xff] }
  0xff   : > { %636 = vmatmul.mubr.f32.gmra.mxu0 %v2919_v25  ;;  %732 = vmatmul.mubr.f32.gmra.mxu1 %v2922_v9  ;;  %v1101_v29 = vld [vmem:[#allocation8 + $0x120] sm:$0xff]  ;;  %v778_v9 = vld [vmem:[#allocation7 + $0x110] sm:$0xff] }
 0x100   : > { %864 = vmatprep.subr.mxu1 %v783_v56  ;;  %1185 = vmatprep.subr.mxu0 %v1104_v57  ;;  %v779_v56 = vld [vmem:[#allocation7 + $0x118] sm:$0xff] }
 0x101   : > { %865 = vmatpush2.msra.mxu1 %v782_v4  ;;  %1186 = vmatpush2.msra.mxu0 %v1103_v5  ;;  %v1100_v57 = vld [vmem:[#allocation8 + $0x118] sm:$0xff]  ;;  %v777_v4 = vld [vmem:[#allocation7 + $0x108] sm:$0xff] }
 0x102   : > { %866 = vmatprep.subr.mxu1 %v781_v20  ;;  %1187 = vmatprep.subr.mxu0 %v1102_v21  ;;  %v1098_v5 = vld [vmem:[#allocation8 + $0x108] sm:$0xff]  ;;  %v776_v20 = vld [vmem:[#allocation7 + $0x100] sm:$0xff] }
 0x103   : > { %641 = vmatprep.mubr.f32.mxu0 %v2929_v45  ;;  %737 = vmatprep.mubr.f32.mxu1 %v2932_v61  ;;  %v1097_v21 = vld [vmem:[#allocation8 + $0x100] sm:$0xff] }
 0x104   : > { %867 = vmatpush2.msra.mxu1 %v780_v28  ;;  %1188 = vmatpush2.msra.mxu0 %v1101_v29 }
 0x105   : > { %642 = vmatmul.mubr.f32.gmra.mxu0 %v2935_v41  ;;  %738 = vmatmul.mubr.f32.gmra.mxu1 %v2938_v43 }
 0x106   : > { %868 = vmatprep.subr.mxu1 %v779_v56  ;;  %1189 = vmatprep.subr.mxu0 %v1100_v57 }
 0x107   : > { %869 = vmatpush2.msra.mxu1 %v778_v9  ;;  %1190 = vmatpush2.msra.mxu0 %v1099_v33 }
 0x108   : > { %870 = vmatprep.subr.mxu1 %v777_v4  ;;  %1191 = vmatprep.subr.mxu0 %v1098_v5 }
 0x109   : > { %871 = vmatpush2.msra.mxu1 %v776_v20  ;;  %872 = vmatprep.mubr.f32.mxu1 %v2689_v0 }
 0x10a   : > { %1192 = vmatpush2.msra.mxu0 %v1097_v21  ;;  %1193 = vmatprep.mubr.f32.mxu0 %v2689_v0 }
 0x10b   : > { %873 = vmatmul.mubr.f32.vlgmr.msra.gmra.mxu1 %v2695_v2  ;;  %1194 = vmatmul.mubr.f32.vlgmr.msra.gmra.mxu0 %v2695_v2 }
 0x10c   : > { %878 = vmatprep.mubr.f32.mxu1 %v2705_v10  ;;  %1199 = vmatprep.mubr.f32.mxu0 %v2705_v10  ;;  %v3441_v10 = vld [vmem:[#allocation29_spill] sm:$0xff] }
 0x10f   : > { %879 = vmatmul.mubr.f32.gmra.mxu1 %v2711_v14  ;;  %1200 = vmatmul.mubr.f32.gmra.mxu0 %v2711_v14 }
 0x110   : > { %884 = vmatprep.mubr.f32.mxu1 %v2721_v22  ;;  %1205 = vmatprep.mubr.f32.mxu0 %v2721_v22 }
 0x113   : > { %885 = vmatmul.mubr.f32.gmra.mxu1 %v2727_v26  ;;  %1206 = vmatmul.mubr.f32.gmra.mxu0 %v2727_v26  ;;  %v3443_v26 = vld [vmem:[#allocation31_spill] sm:$0xff] }
 0x114   : > { %890 = vmatprep.mubr.f32.mxu1 %v2737_v34  ;;  %1211 = vmatprep.mubr.f32.mxu0 %v2737_v34 }
 0x117   : > { %891 = vmatmul.mubr.f32.gmra.mxu1 %v2743_v38  ;;  %1212 = vmatmul.mubr.f32.gmra.mxu0 %v2743_v38  ;;  %v3445_v38 = vld [vmem:[#allocation33_spill] sm:$0xff] }
 0x118   : > { %896 = vmatprep.mubr.f32.mxu1 %v2753_v46  ;;  %1217 = vmatprep.mubr.f32.mxu0 %v2753_v46 }
 0x11b   : > { %897 = vmatmul.mubr.f32.gmra.mxu1 %v2759_v50  ;;  %1218 = vmatmul.mubr.f32.gmra.mxu0 %v2759_v50  ;;  %v3447_v50 = vld [vmem:[#allocation35_spill] sm:$0xff] }
 0x11c   : > { %902 = vmatprep.mubr.f32.mxu1 %v2769_v58  ;;  %1223 = vmatprep.mubr.f32.mxu0 %v2769_v58 }
 0x11f   : > { %903 = vmatmul.mubr.f32.gmra.mxu1 %v2775_v62  ;;  %1224 = vmatmul.mubr.f32.gmra.mxu0 %v2775_v62 }
 0x120   : > { %908 = vmatprep.mubr.f32.mxu1 %v2785_v12  ;;  %1229 = vmatprep.mubr.f32.mxu0 %v2785_v12  ;;  %v3449_v12 = vld [vmem:[#allocation37_spill] sm:$0xff] }
 0x123   : > { %909 = vmatmul.mubr.f32.gmra.mxu1 %v2791_v18  ;;  %1230 = vmatmul.mubr.f32.gmra.mxu0 %v2791_v18 }
 0x124   : > { %914 = vmatprep.mubr.f32.mxu1 %v2801_v30  ;;  %1235 = vmatprep.mubr.f32.mxu0 %v2801_v30 }
 0x127   : > { %915 = vmatmul.mubr.f32.gmra.mxu1 %v2807_v36  ;;  %1236 = vmatmul.mubr.f32.gmra.mxu0 %v2807_v36 }
 0x128   : > { %920 = vmatprep.mubr.f32.mxu1 %v2817_v48  ;;  %1241 = vmatprep.mubr.f32.mxu0 %v2817_v48 }
 0x12b   : > { %921 = vmatmul.mubr.f32.gmra.mxu1 %v2823_v54  ;;  %1242 = vmatmul.mubr.f32.gmra.mxu0 %v2823_v54 }
 0x12c   : > { %926 = vmatprep.mubr.f32.mxu1 %v2833_v6  ;;  %1247 = vmatprep.mubr.f32.mxu0 %v2833_v6 }
 0x12f   : > { %927 = vmatmul.mubr.f32.gmra.mxu1 %v2839_v16  ;;  %1248 = vmatmul.mubr.f32.gmra.mxu0 %v2839_v16 }
 0x130   : > { %932 = vmatprep.mubr.f32.mxu1 %v2849_v32  ;;  %1253 = vmatprep.mubr.f32.mxu0 %v2849_v32 }
 0x133   : > { %933 = vmatmul.mubr.f32.gmra.mxu1 %v2855_v42  ;;  %1254 = vmatmul.mubr.f32.gmra.mxu0 %v2855_v42 }
 0x134   : > { %938 = vmatprep.mubr.f32.mxu1 %v2865_v60  ;;  %1259 = vmatprep.mubr.f32.mxu0 %v2865_v60 }
 0x137   : > { %939 = vmatmul.mubr.f32.gmra.mxu1 %v2871_v8  ;;  %1260 = vmatmul.mubr.f32.gmra.mxu0 %v2871_v8 }
 0x138   : > { %944 = vmatprep.mubr.f32.mxu1 %v2881_v40  ;;  %1265 = vmatprep.mubr.f32.mxu0 %v2881_v40 }
 0x13b   : > { %945 = vmatmul.mubr.f32.gmra.mxu1 %v2887_v52  ;;  %1266 = vmatmul.mubr.f32.gmra.mxu0 %v2887_v52 }
 0x13c   : > { %950 = vmatprep.mubr.f32.mxu1 %v2897_v24  ;;  %1271 = vmatprep.mubr.f32.mxu0 %v2897_v24 }
 0x13f   : > { %951 = vmatmul.mubr.f32.gmra.mxu1 %v2903_v44  ;;  %1272 = vmatmul.mubr.f32.gmra.mxu0 %v2903_v44 }
 0x140   : > { %956 = vmatprep.mubr.f32.mxu1 %v2913_v53  ;;  %1277 = vmatprep.mubr.f32.mxu0 %v2913_v53 }
 0x143   : > { %957 = vmatmul.mubr.f32.gmra.mxu1 %v2919_v25  ;;  %1278 = vmatmul.mubr.f32.gmra.mxu0 %v2919_v25 }
 0x144   : > { %962 = vmatprep.mubr.f32.mxu1 %v2929_v45  ;;  %1283 = vmatprep.mubr.f32.mxu0 %v2929_v45 }
 0x147   : > { %963 = vmatmul.mubr.f32.gmra.mxu1 %v2935_v41  ;;  %1284 = vmatmul.mubr.f32.gmra.mxu0 %v2935_v41 }
 0x148   : > { %968 = vmatprep.mubr.f32.mxu1 %v2692_v1  ;;  %1289 = vmatprep.mubr.f32.mxu0 %v2692_v1 }
 0x14b   : > { %969 = vmatmul.mubr.f32.gmra.mxu1 %v2698_v3  ;;  %1290 = vmatmul.mubr.f32.gmra.mxu0 %v2698_v3 }
 0x14c   : > { %974 = vmatprep.mubr.f32.mxu1 %v2708_v11  ;;  %1295 = vmatprep.mubr.f32.mxu0 %v2708_v11 }
 0x14f   : > { %975 = vmatmul.mubr.f32.gmra.mxu1 %v2714_v15  ;;  %1296 = vmatmul.mubr.f32.gmra.mxu0 %v2714_v15  ;;  %v3442_v15 = vld [vmem:[#allocation30_spill] sm:$0xff] }
 0x150   : > { %980 = vmatprep.mubr.f32.mxu1 %v2724_v23  ;;  %1301 = vmatprep.mubr.f32.mxu0 %v2724_v23 }
 0x153   : > { %981 = vmatmul.mubr.f32.gmra.mxu1 %v2730_v27  ;;  %1302 = vmatmul.mubr.f32.gmra.mxu0 %v2730_v27  ;;  %v3444_v27 = vld [vmem:[#allocation32_spill] sm:$0xff] }
 0x154   : > { %986 = vmatprep.mubr.f32.mxu1 %v2740_v35  ;;  %1307 = vmatprep.mubr.f32.mxu0 %v2740_v35 }
 0x157   : > { %987 = vmatmul.mubr.f32.gmra.mxu1 %v2746_v39  ;;  %1308 = vmatmul.mubr.f32.gmra.mxu0 %v2746_v39 }
 0x158   : > { %992 = vmatprep.mubr.f32.mxu1 %v2756_v47  ;;  %1313 = vmatprep.mubr.f32.mxu0 %v2756_v47  ;;  %v3446_v47 = vld [vmem:[#allocation34_spill] sm:$0xff] }
 0x15b   : > { %993 = vmatmul.mubr.f32.gmra.mxu1 %v2762_v51  ;;  %1314 = vmatmul.mubr.f32.gmra.mxu0 %v2762_v51 }
 0x15c   : > { %998 = vmatprep.mubr.f32.mxu1 %v2772_v59  ;;  %1319 = vmatprep.mubr.f32.mxu0 %v2772_v59  ;;  %v3448_v59 = vld [vmem:[#allocation36_spill] sm:$0xff] }
 0x15f   : > { %999 = vmatmul.mubr.f32.gmra.mxu1 %v2778_v63  ;;  %1320 = vmatmul.mubr.f32.gmra.mxu0 %v2778_v63 }
 0x160   : > { %1004 = vmatprep.mubr.f32.mxu1 %v2788_v13  ;;  %1325 = vmatprep.mubr.f32.mxu0 %v2788_v13  ;;  %v3450_v13 = vld [vmem:[#allocation38_spill] sm:$0xff] }
 0x163   : > { %1005 = vmatmul.mubr.f32.gmra.mxu1 %v2794_v19  ;;  %1326 = vmatmul.mubr.f32.gmra.mxu0 %v2794_v19 }
 0x164   : > { %1010 = vmatprep.mubr.f32.mxu1 %v2804_v31  ;;  %1331 = vmatprep.mubr.f32.mxu0 %v2804_v31 }
 0x167   : > { %1011 = vmatmul.mubr.f32.gmra.mxu1 %v2810_v37  ;;  %1332 = vmatmul.mubr.f32.gmra.mxu0 %v2810_v37 }
 0x168   : > { %1016 = vmatprep.mubr.f32.mxu1 %v2820_v49  ;;  %1337 = vmatprep.mubr.f32.mxu0 %v2820_v49 }
 0x16b   : > { %1017 = vmatmul.mubr.f32.gmra.mxu1 %v2826_v55  ;;  %1338 = vmatmul.mubr.f32.gmra.mxu0 %v2826_v55  ;;  %v553_v0 = vpop.f32.mrf.mxu0  ;;  %v649_v1 = vpop.f32.mrf.mxu1 }
 0x16c   : > { %1022 = vmatprep.mubr.f32.mxu1 %v2836_v7  ;;  %1343 = vmatprep.mubr.f32.mxu0 %v2836_v7  ;;  %1386 = vst [vmem:[%s3047_s2] sm:$0xff] %v553_v0  ;;  %1402 = vst [vmem:[%s3047_s2 + $0x80] sm:$0xff] %v649_v1 }
 0x16d   : > { %v555_v2 = vpop.f32.mrf.mxu0  ;;  %v651_v3 = vpop.f32.mrf.mxu1 }
 0x16e   : > { %1918 = vst [vmem:[%s3047_s2 + $0x100] sm:$0xff] %v555_v2  ;;  %1934 = vst [vmem:[%s3047_s2 + $0x180] sm:$0xff] %v651_v3 }
 0x16f   : > { %1023 = vmatmul.mubr.f32.gmra.mxu1 %v2842_v17  ;;  %1344 = vmatmul.mubr.f32.gmra.mxu0 %v2842_v17 }
 0x170   : > { %1028 = vmatprep.mubr.f32.mxu1 %v3441_v10  ;;  %1349 = vmatprep.mubr.f32.mxu0 %v3441_v10 }
 0x171   : > { %v559_v11 = vpop.f32.mrf.mxu0  ;;  %v655_v14 = vpop.f32.mrf.mxu1 }
 0x172   : > { %1387 = vst [vmem:[%s3047_s2 + $0x8] sm:$0xff] %v559_v11  ;;  %1403 = vst [vmem:[%s3047_s2 + $0x88] sm:$0xff] %v655_v14 }
 0x173   : > { %1029 = vmatmul.mubr.f32.gmra.mxu1 %v3442_v15  ;;  %1350 = vmatmul.mubr.f32.gmra.mxu0 %v3442_v15  ;;  %v561_v22 = vpop.f32.mrf.mxu0  ;;  %v657_v23 = vpop.f32.mrf.mxu1 }
 0x174   : > { %1034 = vmatprep.mubr.f32.mxu1 %v3443_v26  ;;  %1355 = vmatprep.mubr.f32.mxu0 %v3443_v26  ;;  %1919 = vst [vmem:[%s3047_s2 + $0x108] sm:$0xff] %v561_v22  ;;  %1935 = vst [vmem:[%s3047_s2 + $0x188] sm:$0xff] %v657_v23 }
 0x177   : > { %1035 = vmatmul.mubr.f32.gmra.mxu1 %v3444_v27  ;;  %1356 = vmatmul.mubr.f32.gmra.mxu0 %v3444_v27  ;;  %v565_v34 = vpop.f32.mrf.mxu0  ;;  %v661_v35 = vpop.f32.mrf.mxu1 }
 0x178   : > { %1040 = vmatprep.mubr.f32.mxu1 %v3445_v38  ;;  %1361 = vmatprep.mubr.f32.mxu0 %v3445_v38  ;;  %1388 = vst [vmem:[%s3047_s2 + $0x10] sm:$0xff] %v565_v34  ;;  %1404 = vst [vmem:[%s3047_s2 + $0x90] sm:$0xff] %v661_v35 }
 0x179   : > { %v567_v39 = vpop.f32.mrf.mxu0  ;;  %v663_v46 = vpop.f32.mrf.mxu1 }
 0x17a   : > { %1920 = vst [vmem:[%s3047_s2 + $0x110] sm:$0xff] %v567_v39  ;;  %1936 = vst [vmem:[%s3047_s2 + $0x190] sm:$0xff] %v663_v46 }
 0x17b   : > { %1041 = vmatmul.mubr.f32.gmra.mxu1 %v3446_v47  ;;  %1362 = vmatmul.mubr.f32.gmra.mxu0 %v3446_v47 }
 0x17c   : > { %1046 = vmatprep.mubr.f32.mxu1 %v3447_v50  ;;  %1367 = vmatprep.mubr.f32.mxu0 %v3447_v50 }
 0x17d   : > { %v571_v51 = vpop.f32.mrf.mxu0  ;;  %v667_v58 = vpop.f32.mrf.mxu1 }
 0x17e   : > { %1389 = vst [vmem:[%s3047_s2 + $0x18] sm:$0xff] %v571_v51  ;;  %1405 = vst [vmem:[%s3047_s2 + $0x98] sm:$0xff] %v667_v58 }
 0x17f   : > { %1047 = vmatmul.mubr.f32.gmra.mxu1 %v3448_v59  ;;  %1368 = vmatmul.mubr.f32.gmra.mxu0 %v3448_v59  ;;  %v573_v62 = vpop.f32.mrf.mxu0  ;;  %v669_v63 = vpop.f32.mrf.mxu1 }
 0x180   : > { %1052 = vmatprep.mubr.f32.mxu1 %v3449_v12  ;;  %1373 = vmatprep.mubr.f32.mxu0 %v3449_v12  ;;  %1921 = vst [vmem:[%s3047_s2 + $0x118] sm:$0xff] %v573_v62  ;;  %1937 = vst [vmem:[%s3047_s2 + $0x198] sm:$0xff] %v669_v63 }
 0x183   : > { %1053 = vmatmul.mubr.f32.gmra.mxu1 %v3450_v13  ;;  %1374 = vmatmul.mubr.f32.gmra.mxu0 %v3450_v13  ;;  %v577_v18 = vpop.f32.mrf.mxu0  ;;  %v673_v19 = vpop.f32.mrf.mxu1 }
 0x184   : > { %1058 = vmatprep.mubr.f32.mxu1 %v2932_v61  ;;  %1379 = vmatprep.mubr.f32.mxu0 %v2932_v61  ;;  %1390 = vst [vmem:[%s3047_s2 + $0x20] sm:$0xff] %v577_v18  ;;  %1406 = vst [vmem:[%s3047_s2 + $0xa0] sm:$0xff] %v673_v19 }
 0x185   : > { %v579_v30 = vpop.f32.mrf.mxu0  ;;  %v675_v31 = vpop.f32.mrf.mxu1 }
 0x186   : > { %1922 = vst [vmem:[%s3047_s2 + $0x120] sm:$0xff] %v579_v30  ;;  %1938 = vst [vmem:[%s3047_s2 + $0x1a0] sm:$0xff] %v675_v31 }
 0x187   : > { %1059 = vmatmul.mubr.f32.gmra.mxu1 %v2938_v43  ;;  %1380 = vmatmul.mubr.f32.gmra.mxu0 %v2938_v43 }
 0x189   : > { %v583_v36 = vpop.f32.mrf.mxu0  ;;  %v679_v37 = vpop.f32.mrf.mxu1 }
 0x18a   : > { %1391 = vst [vmem:[%s3047_s2 + $0x28] sm:$0xff] %v583_v36  ;;  %1407 = vst [vmem:[%s3047_s2 + $0xa8] sm:$0xff] %v679_v37 }
 0x18b   : > { %v585_v48 = vpop.f32.mrf.mxu0  ;;  %v681_v49 = vpop.f32.mrf.mxu1 }
 0x18c   : > { %1923 = vst [vmem:[%s3047_s2 + $0x128] sm:$0xff] %v585_v48  ;;  %1939 = vst [vmem:[%s3047_s2 + $0x1a8] sm:$0xff] %v681_v49 }
 0x18f   : > { %v589_v54 = vpop.f32.mrf.mxu0  ;;  %v685_v55 = vpop.f32.mrf.mxu1 }
 0x190   : > { %1392 = vst [vmem:[%s3047_s2 + $0x30] sm:$0xff] %v589_v54  ;;  %1408 = vst [vmem:[%s3047_s2 + $0xb0] sm:$0xff] %v685_v55 }
 0x191   : > { %v591_v6 = vpop.f32.mrf.mxu0  ;;  %v687_v7 = vpop.f32.mrf.mxu1 }
 0x192   : > { %1924 = vst [vmem:[%s3047_s2 + $0x130] sm:$0xff] %v591_v6  ;;  %1940 = vst [vmem:[%s3047_s2 + $0x1b0] sm:$0xff] %v687_v7 }
 0x195   : > { %v595_v16 = vpop.f32.mrf.mxu0  ;;  %v691_v17 = vpop.f32.mrf.mxu1 }
 0x196   : > { %1393 = vst [vmem:[%s3047_s2 + $0x38] sm:$0xff] %v595_v16  ;;  %1409 = vst [vmem:[%s3047_s2 + $0xb8] sm:$0xff] %v691_v17 }
 0x197   : > { %v597_v32 = vpop.f32.mrf.mxu0  ;;  %v693_v33 = vpop.f32.mrf.mxu1 }
 0x198   : > { %1925 = vst [vmem:[%s3047_s2 + $0x138] sm:$0xff] %v597_v32  ;;  %1941 = vst [vmem:[%s3047_s2 + $0x1b8] sm:$0xff] %v693_v33 }
 0x19b   : > { %v601_v42 = vpop.f32.mrf.mxu0  ;;  %v697_v43 = vpop.f32.mrf.mxu1 }
 0x19c   : > { %1394 = vst [vmem:[%s3047_s2 + $0x40] sm:$0xff] %v601_v42  ;;  %1410 = vst [vmem:[%s3047_s2 + $0xc0] sm:$0xff] %v697_v43 }
 0x19d   : > { %v603_v60 = vpop.f32.mrf.mxu0  ;;  %v699_v61 = vpop.f32.mrf.mxu1 }
 0x19e   : > { %1926 = vst [vmem:[%s3047_s2 + $0x140] sm:$0xff] %v603_v60  ;;  %1942 = vst [vmem:[%s3047_s2 + $0x1c0] sm:$0xff] %v699_v61 }
 0x1a1   : > { %v607_v8 = vpop.f32.mrf.mxu0  ;;  %v703_v9 = vpop.f32.mrf.mxu1 }
 0x1a2   : > { %1395 = vst [vmem:[%s3047_s2 + $0x48] sm:$0xff] %v607_v8  ;;  %1411 = vst [vmem:[%s3047_s2 + $0xc8] sm:$0xff] %v703_v9 }
 0x1a3   : > { %v609_v40 = vpop.f32.mrf.mxu0  ;;  %v705_v41 = vpop.f32.mrf.mxu1 }
 0x1a4   : > { %1927 = vst [vmem:[%s3047_s2 + $0x148] sm:$0xff] %v609_v40  ;;  %1943 = vst [vmem:[%s3047_s2 + $0x1c8] sm:$0xff] %v705_v41 }
 0x1a7   : > { %v613_v52 = vpop.f32.mrf.mxu0  ;;  %v709_v53 = vpop.f32.mrf.mxu1 }
 0x1a8   : > { %1396 = vst [vmem:[%s3047_s2 + $0x50] sm:$0xff] %v613_v52  ;;  %1412 = vst [vmem:[%s3047_s2 + $0xd0] sm:$0xff] %v709_v53 }
 0x1a9   : > { %v615_v24 = vpop.f32.mrf.mxu0  ;;  %v711_v25 = vpop.f32.mrf.mxu1 }
 0x1aa   : > { %1928 = vst [vmem:[%s3047_s2 + $0x150] sm:$0xff] %v615_v24  ;;  %1944 = vst [vmem:[%s3047_s2 + $0x1d0] sm:$0xff] %v711_v25 }
 0x1ad   : > { %v619_v44 = vpop.f32.mrf.mxu0  ;;  %v715_v45 = vpop.f32.mrf.mxu1 }
 0x1ae   : > { %1397 = vst [vmem:[%s3047_s2 + $0x58] sm:$0xff] %v619_v44  ;;  %1413 = vst [vmem:[%s3047_s2 + $0xd8] sm:$0xff] %v715_v45 }
 0x1af   : > { %v621_v28 = vpop.f32.mrf.mxu0  ;;  %v717_v29 = vpop.f32.mrf.mxu1 }
 0x1b0   : > { %1929 = vst [vmem:[%s3047_s2 + $0x158] sm:$0xff] %v621_v28  ;;  %1945 = vst [vmem:[%s3047_s2 + $0x1d8] sm:$0xff] %v717_v29 }
 0x1b3   : > { %v625_v56 = vpop.f32.mrf.mxu0  ;;  %v721_v57 = vpop.f32.mrf.mxu1 }
 0x1b4   : > { %1398 = vst [vmem:[%s3047_s2 + $0x60] sm:$0xff] %v625_v56  ;;  %1414 = vst [vmem:[%s3047_s2 + $0xe0] sm:$0xff] %v721_v57 }
 0x1b5   : > { %v627_v4 = vpop.f32.mrf.mxu0  ;;  %v723_v5 = vpop.f32.mrf.mxu1 }
 0x1b6   : > { %1930 = vst [vmem:[%s3047_s2 + $0x160] sm:$0xff] %v627_v4  ;;  %1946 = vst [vmem:[%s3047_s2 + $0x1e0] sm:$0xff] %v723_v5 }
 0x1b9   : > { %v631_v20 = vpop.f32.mrf.mxu0  ;;  %v727_v21 = vpop.f32.mrf.mxu1 }
 0x1ba   : > { %1399 = vst [vmem:[%s3047_s2 + $0x68] sm:$0xff] %v631_v20  ;;  %1415 = vst [vmem:[%s3047_s2 + $0xe8] sm:$0xff] %v727_v21 }
 0x1bb   : > { %v633_v0 = vpop.f32.mrf.mxu0  ;;  %v729_v1 = vpop.f32.mrf.mxu1 }
 0x1bc   : > { %1931 = vst [vmem:[%s3047_s2 + $0x168] sm:$0xff] %v633_v0  ;;  %1947 = vst [vmem:[%s3047_s2 + $0x1e8] sm:$0xff] %v729_v1 }
 0x1bf   : > { %v637_v2 = vpop.f32.mrf.mxu0  ;;  %v733_v3 = vpop.f32.mrf.mxu1 }
 0x1c0   : > { %1400 = vst [vmem:[%s3047_s2 + $0x70] sm:$0xff] %v637_v2  ;;  %1416 = vst [vmem:[%s3047_s2 + $0xf0] sm:$0xff] %v733_v3 }
 0x1c1   : > { %v639_v10 = vpop.f32.mrf.mxu0  ;;  %v735_v11 = vpop.f32.mrf.mxu1 }
 0x1c2   : > { %1932 = vst [vmem:[%s3047_s2 + $0x170] sm:$0xff] %v639_v10  ;;  %1948 = vst [vmem:[%s3047_s2 + $0x1f0] sm:$0xff] %v735_v11 }
 0x1c5   : > { %v643_v14 = vpop.f32.mrf.mxu0  ;;  %v739_v15 = vpop.f32.mrf.mxu1 }
 0x1c6   : > { %1401 = vst [vmem:[%s3047_s2 + $0x78] sm:$0xff] %v643_v14  ;;  %1417 = vst [vmem:[%s3047_s2 + $0xf8] sm:$0xff] %v739_v15 }
 0x1c7   : > { %v645_v22 = vpop.f32.mrf.mxu0  ;;  %v741_v23 = vpop.f32.mrf.mxu1 }
 0x1c8   : > { %1933 = vst [vmem:[%s3047_s2 + $0x178] sm:$0xff] %v645_v22  ;;  %1949 = vst [vmem:[%s3047_s2 + $0x1f8] sm:$0xff] %v741_v23 }
 0x1cb   : > { %v874_v26 = vpop.f32.mrf.mxu1  ;;  %v1195_v27 = vpop.f32.mrf.mxu0 }
 0x1cc   : > { %1418 = vst [vmem:[%s3141_s7] sm:$0xff] %v874_v26  ;;  %1450 = vst [vmem:[%s3145_s9] sm:$0xff] %v1195_v27 }
 0x1cd   : > { %v876_v34 = vpop.f32.mrf.mxu1  ;;  %v1197_v35 = vpop.f32.mrf.mxu0 }
 0x1ce   : > { %1950 = vst [vmem:[%s3141_s7 + $0x100] sm:$0xff] %v876_v34  ;;  %1982 = vst [vmem:[%s3145_s9 + $0x100] sm:$0xff] %v1197_v35 }
 0x1cf   : > { %v880_v38 = vpop.f32.mrf.mxu1  ;;  %v1201_v39 = vpop.f32.mrf.mxu0 }
 0x1d0   : > { %1419 = vst [vmem:[%s3141_s7 + $0x8] sm:$0xff] %v880_v38  ;;  %1451 = vst [vmem:[%s3145_s9 + $0x8] sm:$0xff] %v1201_v39 }
 0x1d1   : > { %v882_v46 = vpop.f32.mrf.mxu1  ;;  %v1203_v47 = vpop.f32.mrf.mxu0 }
 0x1d2   : > { %1951 = vst [vmem:[%s3141_s7 + $0x108] sm:$0xff] %v882_v46  ;;  %1983 = vst [vmem:[%s3145_s9 + $0x108] sm:$0xff] %v1203_v47 }
 0x1d3   : > { %v886_v50 = vpop.f32.mrf.mxu1  ;;  %v1207_v51 = vpop.f32.mrf.mxu0 }
 0x1d4   : > { %1420 = vst [vmem:[%s3141_s7 + $0x10] sm:$0xff] %v886_v50  ;;  %1452 = vst [vmem:[%s3145_s9 + $0x10] sm:$0xff] %v1207_v51 }
 0x1d5   : > { %v888_v58 = vpop.f32.mrf.mxu1  ;;  %v1209_v59 = vpop.f32.mrf.mxu0 }
 0x1d6   : > { %1952 = vst [vmem:[%s3141_s7 + $0x110] sm:$0xff] %v888_v58  ;;  %1984 = vst [vmem:[%s3145_s9 + $0x110] sm:$0xff] %v1209_v59 }
 0x1d7   : > { %v892_v62 = vpop.f32.mrf.mxu1  ;;  %v1213_v63 = vpop.f32.mrf.mxu0 }
 0x1d8   : > { %1421 = vst [vmem:[%s3141_s7 + $0x18] sm:$0xff] %v892_v62  ;;  %1453 = vst [vmem:[%s3145_s9 + $0x18] sm:$0xff] %v1213_v63 }
 0x1d9   : > { %v894_v12 = vpop.f32.mrf.mxu1  ;;  %v1215_v13 = vpop.f32.mrf.mxu0 }
 0x1da   : > { %1953 = vst [vmem:[%s3141_s7 + $0x118] sm:$0xff] %v894_v12  ;;  %1985 = vst [vmem:[%s3145_s9 + $0x118] sm:$0xff] %v1215_v13 }
 0x1db   : > { %v898_v18 = vpop.f32.mrf.mxu1  ;;  %v1219_v19 = vpop.f32.mrf.mxu0 }
 0x1dc   : > { %1422 = vst [vmem:[%s3141_s7 + $0x20] sm:$0xff] %v898_v18  ;;  %1454 = vst [vmem:[%s3145_s9 + $0x20] sm:$0xff] %v1219_v19 }
 0x1dd   : > { %v900_v30 = vpop.f32.mrf.mxu1  ;;  %v1221_v31 = vpop.f32.mrf.mxu0 }
 0x1de   : > { %1954 = vst [vmem:[%s3141_s7 + $0x120] sm:$0xff] %v900_v30  ;;  %1986 = vst [vmem:[%s3145_s9 + $0x120] sm:$0xff] %v1221_v31 }
 0x1df   : > { %v904_v36 = vpop.f32.mrf.mxu1  ;;  %v1225_v37 = vpop.f32.mrf.mxu0 }
 0x1e0   : > { %1423 = vst [vmem:[%s3141_s7 + $0x28] sm:$0xff] %v904_v36  ;;  %1455 = vst [vmem:[%s3145_s9 + $0x28] sm:$0xff] %v1225_v37 }
 0x1e1   : > { %v906_v48 = vpop.f32.mrf.mxu1  ;;  %v1227_v49 = vpop.f32.mrf.mxu0 }
 0x1e2   : > { %1955 = vst [vmem:[%s3141_s7 + $0x128] sm:$0xff] %v906_v48  ;;  %1987 = vst [vmem:[%s3145_s9 + $0x128] sm:$0xff] %v1227_v49 }
 0x1e3   : > { %v910_v54 = vpop.f32.mrf.mxu1  ;;  %v1231_v55 = vpop.f32.mrf.mxu0 }
 0x1e4   : > { %1424 = vst [vmem:[%s3141_s7 + $0x30] sm:$0xff] %v910_v54  ;;  %1456 = vst [vmem:[%s3145_s9 + $0x30] sm:$0xff] %v1231_v55 }
 0x1e5   : > { %v912_v6 = vpop.f32.mrf.mxu1  ;;  %v1233_v7 = vpop.f32.mrf.mxu0 }
 0x1e6   : > { %1956 = vst [vmem:[%s3141_s7 + $0x130] sm:$0xff] %v912_v6  ;;  %1988 = vst [vmem:[%s3145_s9 + $0x130] sm:$0xff] %v1233_v7 }
 0x1e7   : > { %v916_v16 = vpop.f32.mrf.mxu1  ;;  %v1237_v17 = vpop.f32.mrf.mxu0 }
 0x1e8   : > { %1425 = vst [vmem:[%s3141_s7 + $0x38] sm:$0xff] %v916_v16  ;;  %1457 = vst [vmem:[%s3145_s9 + $0x38] sm:$0xff] %v1237_v17 }
 0x1e9   : > { %v918_v32 = vpop.f32.mrf.mxu1  ;;  %v1239_v33 = vpop.f32.mrf.mxu0 }
 0x1ea   : > { %1957 = vst [vmem:[%s3141_s7 + $0x138] sm:$0xff] %v918_v32  ;;  %1989 = vst [vmem:[%s3145_s9 + $0x138] sm:$0xff] %v1239_v33 }
 0x1eb   : > { %v922_v42 = vpop.f32.mrf.mxu1  ;;  %v1243_v43 = vpop.f32.mrf.mxu0 }
 0x1ec   : > { %1426 = vst [vmem:[%s3141_s7 + $0x40] sm:$0xff] %v922_v42  ;;  %1458 = vst [vmem:[%s3145_s9 + $0x40] sm:$0xff] %v1243_v43 }
 0x1ed   : > { %v924_v60 = vpop.f32.mrf.mxu1  ;;  %v1245_v61 = vpop.f32.mrf.mxu0 }
 0x1ee   : > { %1958 = vst [vmem:[%s3141_s7 + $0x140] sm:$0xff] %v924_v60  ;;  %1990 = vst [vmem:[%s3145_s9 + $0x140] sm:$0xff] %v1245_v61 }
 0x1ef   : > { %v928_v8 = vpop.f32.mrf.mxu1  ;;  %v1249_v9 = vpop.f32.mrf.mxu0 }
 0x1f0   : > { %1427 = vst [vmem:[%s3141_s7 + $0x48] sm:$0xff] %v928_v8  ;;  %1459 = vst [vmem:[%s3145_s9 + $0x48] sm:$0xff] %v1249_v9 }
 0x1f1   : > { %v930_v40 = vpop.f32.mrf.mxu1  ;;  %v1251_v41 = vpop.f32.mrf.mxu0 }
 0x1f2   : > { %1959 = vst [vmem:[%s3141_s7 + $0x148] sm:$0xff] %v930_v40  ;;  %1991 = vst [vmem:[%s3145_s9 + $0x148] sm:$0xff] %v1251_v41 }
 0x1f3   : > { %v934_v52 = vpop.f32.mrf.mxu1  ;;  %v1255_v53 = vpop.f32.mrf.mxu0 }
 0x1f4   : > { %1428 = vst [vmem:[%s3141_s7 + $0x50] sm:$0xff] %v934_v52  ;;  %1460 = vst [vmem:[%s3145_s9 + $0x50] sm:$0xff] %v1255_v53 }
 0x1f5   : > { %v936_v24 = vpop.f32.mrf.mxu1  ;;  %v1257_v25 = vpop.f32.mrf.mxu0 }
 0x1f6   : > { %1960 = vst [vmem:[%s3141_s7 + $0x150] sm:$0xff] %v936_v24  ;;  %1992 = vst [vmem:[%s3145_s9 + $0x150] sm:$0xff] %v1257_v25 }
 0x1f7   : > { %v940_v44 = vpop.f32.mrf.mxu1  ;;  %v1261_v45 = vpop.f32.mrf.mxu0 }
 0x1f8   : > { %1429 = vst [vmem:[%s3141_s7 + $0x58] sm:$0xff] %v940_v44  ;;  %1461 = vst [vmem:[%s3145_s9 + $0x58] sm:$0xff] %v1261_v45 }
 0x1f9   : > { %v942_v28 = vpop.f32.mrf.mxu1  ;;  %v1263_v29 = vpop.f32.mrf.mxu0 }
 0x1fa   : > { %1961 = vst [vmem:[%s3141_s7 + $0x158] sm:$0xff] %v942_v28  ;;  %1993 = vst [vmem:[%s3145_s9 + $0x158] sm:$0xff] %v1263_v29 }
 0x1fb   : > { %v946_v56 = vpop.f32.mrf.mxu1  ;;  %v1267_v57 = vpop.f32.mrf.mxu0 }
 0x1fc   : > { %1430 = vst [vmem:[%s3141_s7 + $0x60] sm:$0xff] %v946_v56  ;;  %1462 = vst [vmem:[%s3145_s9 + $0x60] sm:$0xff] %v1267_v57 }
 0x1fd   : > { %v948_v4 = vpop.f32.mrf.mxu1  ;;  %v1269_v5 = vpop.f32.mrf.mxu0 }
 0x1fe   : > { %1962 = vst [vmem:[%s3141_s7 + $0x160] sm:$0xff] %v948_v4  ;;  %1994 = vst [vmem:[%s3145_s9 + $0x160] sm:$0xff] %v1269_v5 }
 0x1ff   : > { %v952_v20 = vpop.f32.mrf.mxu1  ;;  %v1273_v21 = vpop.f32.mrf.mxu0 }
 0x200   : > { %1431 = vst [vmem:[%s3141_s7 + $0x68] sm:$0xff] %v952_v20  ;;  %1463 = vst [vmem:[%s3145_s9 + $0x68] sm:$0xff] %v1273_v21 }
 0x201   : > { %v954_v0 = vpop.f32.mrf.mxu1  ;;  %v1275_v1 = vpop.f32.mrf.mxu0 }
 0x202   : > { %1963 = vst [vmem:[%s3141_s7 + $0x168] sm:$0xff] %v954_v0  ;;  %1995 = vst [vmem:[%s3145_s9 + $0x168] sm:$0xff] %v1275_v1 }
 0x203   : > { %v958_v2 = vpop.f32.mrf.mxu1  ;;  %v1279_v3 = vpop.f32.mrf.mxu0 }
 0x204   : > { %1432 = vst [vmem:[%s3141_s7 + $0x70] sm:$0xff] %v958_v2  ;;  %1464 = vst [vmem:[%s3145_s9 + $0x70] sm:$0xff] %v1279_v3 }
 0x205   : > { %v960_v10 = vpop.f32.mrf.mxu1  ;;  %v1281_v11 = vpop.f32.mrf.mxu0 }
 0x206   : > { %1964 = vst [vmem:[%s3141_s7 + $0x170] sm:$0xff] %v960_v10  ;;  %1996 = vst [vmem:[%s3145_s9 + $0x170] sm:$0xff] %v1281_v11 }
 0x207   : > { %v964_v14 = vpop.f32.mrf.mxu1  ;;  %v1285_v15 = vpop.f32.mrf.mxu0 }
 0x208   : > { %1433 = vst [vmem:[%s3141_s7 + $0x78] sm:$0xff] %v964_v14  ;;  %1465 = vst [vmem:[%s3145_s9 + $0x78] sm:$0xff] %v1285_v15 }
 0x209   : > { %v966_v22 = vpop.f32.mrf.mxu1  ;;  %v1287_v23 = vpop.f32.mrf.mxu0 }
 0x20a   : > { %1965 = vst [vmem:[%s3141_s7 + $0x178] sm:$0xff] %v966_v22  ;;  %1997 = vst [vmem:[%s3145_s9 + $0x178] sm:$0xff] %v1287_v23 }
 0x20b   : > { %v970_v26 = vpop.f32.mrf.mxu1  ;;  %v1291_v27 = vpop.f32.mrf.mxu0 }
 0x20c   : > { %1434 = vst [vmem:[%s3141_s7 + $0x80] sm:$0xff] %v970_v26  ;;  %1466 = vst [vmem:[%s3145_s9 + $0x80] sm:$0xff] %v1291_v27 }
 0x20d   : > { %v972_v34 = vpop.f32.mrf.mxu1  ;;  %v1293_v35 = vpop.f32.mrf.mxu0 }
 0x20e   : > { %1966 = vst [vmem:[%s3141_s7 + $0x180] sm:$0xff] %v972_v34  ;;  %1998 = vst [vmem:[%s3145_s9 + $0x180] sm:$0xff] %v1293_v35 }
 0x20f   : > { %v976_v38 = vpop.f32.mrf.mxu1  ;;  %v1297_v39 = vpop.f32.mrf.mxu0 }
 0x210   : > { %1435 = vst [vmem:[%s3141_s7 + $0x88] sm:$0xff] %v976_v38  ;;  %1467 = vst [vmem:[%s3145_s9 + $0x88] sm:$0xff] %v1297_v39 }
 0x211   : > { %v978_v46 = vpop.f32.mrf.mxu1  ;;  %v1299_v47 = vpop.f32.mrf.mxu0 }
 0x212   : > { %1967 = vst [vmem:[%s3141_s7 + $0x188] sm:$0xff] %v978_v46  ;;  %1999 = vst [vmem:[%s3145_s9 + $0x188] sm:$0xff] %v1299_v47 }
 0x213   : > { %v982_v50 = vpop.f32.mrf.mxu1  ;;  %v1303_v51 = vpop.f32.mrf.mxu0 }
 0x214   : > { %1436 = vst [vmem:[%s3141_s7 + $0x90] sm:$0xff] %v982_v50  ;;  %1468 = vst [vmem:[%s3145_s9 + $0x90] sm:$0xff] %v1303_v51 }
 0x215   : > { %v984_v58 = vpop.f32.mrf.mxu1  ;;  %v1305_v59 = vpop.f32.mrf.mxu0 }
 0x216   : > { %1968 = vst [vmem:[%s3141_s7 + $0x190] sm:$0xff] %v984_v58  ;;  %2000 = vst [vmem:[%s3145_s9 + $0x190] sm:$0xff] %v1305_v59 }
 0x217   : > { %v988_v62 = vpop.f32.mrf.mxu1  ;;  %v1309_v63 = vpop.f32.mrf.mxu0 }
 0x218   : > { %1437 = vst [vmem:[%s3141_s7 + $0x98] sm:$0xff] %v988_v62  ;;  %1469 = vst [vmem:[%s3145_s9 + $0x98] sm:$0xff] %v1309_v63 }
 0x219   : > { %v990_v12 = vpop.f32.mrf.mxu1  ;;  %v1311_v13 = vpop.f32.mrf.mxu0 }
 0x21a   : > { %1969 = vst [vmem:[%s3141_s7 + $0x198] sm:$0xff] %v990_v12  ;;  %2001 = vst [vmem:[%s3145_s9 + $0x198] sm:$0xff] %v1311_v13 }
 0x21b   : > { %v994_v18 = vpop.f32.mrf.mxu1  ;;  %v1315_v19 = vpop.f32.mrf.mxu0 }
 0x21c   : > { %1438 = vst [vmem:[%s3141_s7 + $0xa0] sm:$0xff] %v994_v18  ;;  %1470 = vst [vmem:[%s3145_s9 + $0xa0] sm:$0xff] %v1315_v19 }
 0x21d   : > { %v996_v30 = vpop.f32.mrf.mxu1  ;;  %v1317_v31 = vpop.f32.mrf.mxu0 }
 0x21e   : > { %1970 = vst [vmem:[%s3141_s7 + $0x1a0] sm:$0xff] %v996_v30  ;;  %2002 = vst [vmem:[%s3145_s9 + $0x1a0] sm:$0xff] %v1317_v31 }
 0x21f   : > { %v1000_v36 = vpop.f32.mrf.mxu1  ;;  %v1321_v37 = vpop.f32.mrf.mxu0 }
 0x220   : > { %1439 = vst [vmem:[%s3141_s7 + $0xa8] sm:$0xff] %v1000_v36  ;;  %1471 = vst [vmem:[%s3145_s9 + $0xa8] sm:$0xff] %v1321_v37 }
 0x221   : > { %v1002_v48 = vpop.f32.mrf.mxu1  ;;  %v1323_v49 = vpop.f32.mrf.mxu0 }
 0x222   : > { %1971 = vst [vmem:[%s3141_s7 + $0x1a8] sm:$0xff] %v1002_v48  ;;  %2003 = vst [vmem:[%s3145_s9 + $0x1a8] sm:$0xff] %v1323_v49 }
 0x223   : > { %v1006_v54 = vpop.f32.mrf.mxu1  ;;  %v1327_v55 = vpop.f32.mrf.mxu0 }
 0x224   : > { %1440 = vst [vmem:[%s3141_s7 + $0xb0] sm:$0xff] %v1006_v54  ;;  %1472 = vst [vmem:[%s3145_s9 + $0xb0] sm:$0xff] %v1327_v55 }
 0x225   : > { %v1008_v6 = vpop.f32.mrf.mxu1  ;;  %v1329_v7 = vpop.f32.mrf.mxu0 }
 0x226   : > { %1972 = vst [vmem:[%s3141_s7 + $0x1b0] sm:$0xff] %v1008_v6  ;;  %2004 = vst [vmem:[%s3145_s9 + $0x1b0] sm:$0xff] %v1329_v7 }
 0x227   : > { %v1012_v16 = vpop.f32.mrf.mxu1  ;;  %v1333_v17 = vpop.f32.mrf.mxu0 }
 0x228   : > { %1441 = vst [vmem:[%s3141_s7 + $0xb8] sm:$0xff] %v1012_v16  ;;  %1473 = vst [vmem:[%s3145_s9 + $0xb8] sm:$0xff] %v1333_v17 }
 0x229   : > { %v1014_v32 = vpop.f32.mrf.mxu1  ;;  %v1335_v33 = vpop.f32.mrf.mxu0 }
 0x22a   : > { %1973 = vst [vmem:[%s3141_s7 + $0x1b8] sm:$0xff] %v1014_v32  ;;  %2005 = vst [vmem:[%s3145_s9 + $0x1b8] sm:$0xff] %v1335_v33 }
 0x22b   : > { %v1018_v42 = vpop.f32.mrf.mxu1  ;;  %v1339_v43 = vpop.f32.mrf.mxu0 }
 0x22c   : > { %1442 = vst [vmem:[%s3141_s7 + $0xc0] sm:$0xff] %v1018_v42  ;;  %1474 = vst [vmem:[%s3145_s9 + $0xc0] sm:$0xff] %v1339_v43 }
 0x22d   : > { %v1020_v60 = vpop.f32.mrf.mxu1  ;;  %v1341_v61 = vpop.f32.mrf.mxu0 }
 0x22e   : > { %1974 = vst [vmem:[%s3141_s7 + $0x1c0] sm:$0xff] %v1020_v60  ;;  %2006 = vst [vmem:[%s3145_s9 + $0x1c0] sm:$0xff] %v1341_v61 }
 0x22f   : > { %v1024_v8 = vpop.f32.mrf.mxu1  ;;  %v1345_v9 = vpop.f32.mrf.mxu0 }
 0x230   : > { %1443 = vst [vmem:[%s3141_s7 + $0xc8] sm:$0xff] %v1024_v8  ;;  %1475 = vst [vmem:[%s3145_s9 + $0xc8] sm:$0xff] %v1345_v9 }
 0x231   : > { %v1026_v40 = vpop.f32.mrf.mxu1  ;;  %v1347_v41 = vpop.f32.mrf.mxu0 }
 0x232   : > { %1975 = vst [vmem:[%s3141_s7 + $0x1c8] sm:$0xff] %v1026_v40  ;;  %2007 = vst [vmem:[%s3145_s9 + $0x1c8] sm:$0xff] %v1347_v41 }
 0x233   : > { %v1030_v52 = vpop.f32.mrf.mxu1  ;;  %v1351_v53 = vpop.f32.mrf.mxu0 }
 0x234   : > { %1444 = vst [vmem:[%s3141_s7 + $0xd0] sm:$0xff] %v1030_v52  ;;  %1476 = vst [vmem:[%s3145_s9 + $0xd0] sm:$0xff] %v1351_v53 }
 0x235   : > { %v1032_v24 = vpop.f32.mrf.mxu1  ;;  %v1353_v25 = vpop.f32.mrf.mxu0 }
 0x236   : > { %1976 = vst [vmem:[%s3141_s7 + $0x1d0] sm:$0xff] %v1032_v24  ;;  %2008 = vst [vmem:[%s3145_s9 + $0x1d0] sm:$0xff] %v1353_v25 }
 0x237   : > { %v1036_v44 = vpop.f32.mrf.mxu1  ;;  %v1357_v45 = vpop.f32.mrf.mxu0 }
 0x238   : > { %1445 = vst [vmem:[%s3141_s7 + $0xd8] sm:$0xff] %v1036_v44  ;;  %1477 = vst [vmem:[%s3145_s9 + $0xd8] sm:$0xff] %v1357_v45 }
 0x239   : > { %v1038_v28 = vpop.f32.mrf.mxu1  ;;  %v1359_v29 = vpop.f32.mrf.mxu0 }
 0x23a   : > { %1977 = vst [vmem:[%s3141_s7 + $0x1d8] sm:$0xff] %v1038_v28  ;;  %2009 = vst [vmem:[%s3145_s9 + $0x1d8] sm:$0xff] %v1359_v29 }
 0x23b   : > { %v1042_v56 = vpop.f32.mrf.mxu1  ;;  %v1363_v57 = vpop.f32.mrf.mxu0 }
 0x23c   : > { %1446 = vst [vmem:[%s3141_s7 + $0xe0] sm:$0xff] %v1042_v56  ;;  %1478 = vst [vmem:[%s3145_s9 + $0xe0] sm:$0xff] %v1363_v57 }
 0x23d   : > { %v1044_v4 = vpop.f32.mrf.mxu1  ;;  %v1365_v5 = vpop.f32.mrf.mxu0 }
 0x23e   : > { %1978 = vst [vmem:[%s3141_s7 + $0x1e0] sm:$0xff] %v1044_v4  ;;  %2010 = vst [vmem:[%s3145_s9 + $0x1e0] sm:$0xff] %v1365_v5 }
 0x23f   : > { %v1048_v20 = vpop.f32.mrf.mxu1  ;;  %v1369_v21 = vpop.f32.mrf.mxu0 }
 0x240   : > { %1447 = vst [vmem:[%s3141_s7 + $0xe8] sm:$0xff] %v1048_v20  ;;  %1479 = vst [vmem:[%s3145_s9 + $0xe8] sm:$0xff] %v1369_v21 }
 0x241   : > { %v1050_v0 = vpop.f32.mrf.mxu1  ;;  %v1371_v1 = vpop.f32.mrf.mxu0 }
 0x242   : > { %1979 = vst [vmem:[%s3141_s7 + $0x1e8] sm:$0xff] %v1050_v0  ;;  %2011 = vst [vmem:[%s3145_s9 + $0x1e8] sm:$0xff] %v1371_v1 }
 0x243   : > { %v1054_v2 = vpop.f32.mrf.mxu1  ;;  %v1375_v3 = vpop.f32.mrf.mxu0 }
 0x244   : > { %1448 = vst [vmem:[%s3141_s7 + $0xf0] sm:$0xff] %v1054_v2  ;;  %1480 = vst [vmem:[%s3145_s9 + $0xf0] sm:$0xff] %v1375_v3 }
 0x245   : > { %v1056_v10 = vpop.f32.mrf.mxu1  ;;  %v1377_v11 = vpop.f32.mrf.mxu0 }
 0x246   : > { %1980 = vst [vmem:[%s3141_s7 + $0x1f0] sm:$0xff] %v1056_v10  ;;  %2012 = vst [vmem:[%s3145_s9 + $0x1f0] sm:$0xff] %v1377_v11 }
 0x247   : > { %v1060_v14 = vpop.f32.mrf.mxu1  ;;  %v1381_v15 = vpop.f32.mrf.mxu0 }
 0x248   : > { %1449 = vst [vmem:[%s3141_s7 + $0xf8] sm:$0xff] %v1060_v14  ;;  %1481 = vst [vmem:[%s3145_s9 + $0xf8] sm:$0xff] %v1381_v15 }
 0x249   : > { %v1062_v22 = vpop.f32.mrf.mxu1  ;;  %v1383_v23 = vpop.f32.mrf.mxu0 }
 0x24a   : > { %1981 = vst [vmem:[%s3141_s7 + $0x1f8] sm:$0xff] %v1062_v22  ;;  %2013 = vst [vmem:[%s3145_s9 + $0x1f8] sm:$0xff] %v1383_v23 }
 0x24b   : > { %s2017_s15 = sshll.u32 %s2425_s24, 5  ;;  %s2018_s30 = sshll.u32 %s2429_s25, 7 }
 0x24c   : > { %s1604_s1 = sadd.s32 %s2018_s30, %s2017_s15  ;;  %s1617_s18 = sshll.u32 %s3047_s2, 4  ;;  %s1618_s18 = int_to_ptr.vmem [resolvable:$true] %s1617_s18 }
 0x24d   : > { %s3282_s19 = sshll.u32 %s1604_s1, 7  ;;  %s2449_s26 = smov 4096  }
 0x24e   : > { %s1606_s6 = scalar_lea.hbm %s3376_s4, %s3282_s19  ;;  %2107 = sst [smem:[#allocation15]] (%p2627_p13), %s2449_s26 }
 0x24f   : > { %s2450_s8 = smov 8192   ;;  %s2451_s24 = smov 32  }
 0x250   : > { %2108 = sst [smem:[#allocation15 + $0x1]] (%p2627_p13), %s2450_s8  ;;  %s2452_s25 = smov 128  }
 0x251   : > { %2109 = sst [smem:[#allocation15 + $0x2]] (%p2627_p13), %s2451_s24  ;;  %s2453_s13 = smov 8  }
 0x252   : > { %2110 = sst [smem:[#allocation15 + $0x3]] (%p2627_p13), %s2452_s25  ;;  %s2454_s16 = smov 131072  }
 0x253   : > { %2111 = sst [smem:[#allocation15 + $0x4]] (%p2627_p13), %s2452_s25  ;;  %s2455_s11 = smov 0  }
 0x254   : > { %2112 = sst [smem:[#allocation15 + $0x5]] (%p2627_p13), %s2453_s13 }
 0x255   : > { %2113 = dma.general (%p2627_p13), %s1618_s18, 8192, %s1606_s6, %s1582_s20, %s2454_s16, [#allocation15], %s2455_s11, 0  }
 0x256   : > { %s1647_s15 = scalar_lea.hbm %s3377_s5, %s3282_s19  ;;  %s1658_s30 = sshll.u32 %s3141_s7, 4  ;;  %s1659_s30 = int_to_ptr.vmem [resolvable:$true] %s1658_s30 }
 0x257   : > { %s2456_s1 = smov 4096   ;;  %s2457_s20 = smov 8192  }
 0x258   : > { %2114 = sst [smem:[#allocation17]] (%p2627_p13), %s2456_s1  ;;  %s2458_s18 = smov 32  }
 0x259   : > { %2115 = sst [smem:[#allocation17 + $0x1]] (%p2627_p13), %s2457_s20  ;;  %s2459_s29 = smov 128  }
 0x25a   : > { %2116 = sst [smem:[#allocation17 + $0x2]] (%p2627_p13), %s2458_s18  ;;  %s2460_s12 = smov 8  }
 0x25b   : > { %2117 = sst [smem:[#allocation17 + $0x3]] (%p2627_p13), %s2459_s29  ;;  %s2461_s6 = smov 131072  }
 0x25c   : > { %2118 = sst [smem:[#allocation17 + $0x4]] (%p2627_p13), %s2459_s29  ;;  %s2462_s7 = smov 0  }
 0x25d   : > { %2119 = sst [smem:[#allocation17 + $0x5]] (%p2627_p13), %s2460_s12 }
 0x25e   : > { %2120 = dma.general (%p2627_p13), %s1659_s30, 8192, %s1647_s15, %s3277_s10, %s2461_s6, [#allocation17], %s2462_s7, 0  }
 0x25f   : > { %s3451_s24 = sld [smem:[#allocation42_spill]]  ;;  %s1699_s13 = sshll.u32 %s3145_s9, 4  ;;  %s1700_s13 = int_to_ptr.vmem [resolvable:$true] %s1699_s13 }
 0x260   : > { %s2463_s16 = smov 4096   ;;  %s2464_s11 = smov 8192  }
 0x261   : > { %2121 = sst [smem:[#allocation19]] (%p2627_p13), %s2463_s16  ;;  %s2465_s2 = smov 32  }
 0x262   : > { %2122 = sst [smem:[#allocation19 + $0x1]] (%p2627_p13), %s2464_s11  ;;  %s2466_s21 = smov 128  }
 0x263   : > { %2123 = sst [smem:[#allocation19 + $0x2]] (%p2627_p13), %s2465_s2  ;;  %s2467_s15 = smov 8  }
 0x264   : > { %2124 = sst [smem:[#allocation19 + $0x3]] (%p2627_p13), %s2466_s21  ;;  %s2469_s9 = smov 0  }
 0x265   : > { %s1688_s25 = scalar_lea.hbm %s3451_s24, %s3282_s19  ;;  %2125 = sst [smem:[#allocation19 + $0x4]] (%p2627_p13), %s2466_s21 }
 0x266   : > { %2126 = sst [smem:[#allocation19 + $0x5]] (%p2627_p13), %s2467_s15  ;;  %s2468_s19 = smov 131072  }
 0x267   : > { %2127 = dma.general (%p2627_p13), %s1700_s13, 8192, %s1688_s25, %s3277_s10, %s2468_s19, [#allocation19], %s2469_s9, 0  }
 0x268 PF: > { %s3452_s30 = sld [smem:[#allocation25_spill]]  ;;  %p2162_p4 = scmp.ge.s32.totalorder %s2441_s28, 2 }
 0x26a   : > { %p2146_p7 = pnand %p2162_p4, %p2562_p6 }
 0x26c   : > { %p2147_p1 = pneg %p2146_p7 }
 0x26e   : > { %s1727_s20 = sand.u32 1, %s3452_s30  }
 0x26f   : > { %s1728_s18 = scalar_lea.sflag [#allocation4], %s1727_s20 }
 0x270   : > { %2404 = dma.done.wait (%p2147_p1), %s1728_s18, 8192  }
 0x271   : > { %2406 = vsyncadd (%p2147_p1), %s1728_s18, 4294959104  ;;  %s3454_s29 = sadd.s32 4294967294, %s2441_s28  }
 0x272   : > { %s1736_s12 = sand.u32 1, %s3454_s29  }
 0x273   : > { %s1737_s6 = scalar_lea.sflag [#allocation12], %s1736_s12 }
 0x274   : > { %2408 = dma.done.wait (%p2147_p1), %s1737_s6, 16384  }
 0x275   : > { %2410 = vsyncadd (%p2147_p1), %s1737_s6, 4294950912  ;;  %s28_s28 = sadd.s32 1, %s2441_s28   ;;  %s3455_s24 = sld [smem:[#allocation26_spill]] }
 0x276   : > { %p25_p13 = scmp.ge.s32.totalorder %s28_s28, 6   ;;  %s3456_s26 = sld [smem:[#allocation28_spill]] }
 0x277   : > { %s3457_s21 = smov %s2417_s22  ;;  %s3458_s22 = smov %s2421_s23 }
 0x278   : > { %s3459_s23 = smov %s2644_s3  ;;  %s3460_s25 = smov %s2437_s27 }
 0x279   : > { %s3461_s27 = smov %s3467_s14  ;;  %27 = sbr.rel (!%p25_p13) target bundleno = 16 (0x10), region = 143 }
 0x27e   :  { %1751 = vsyncpa [#allocation3], 1 }
 0x27f   :  { %1753 = vsyncpa [#allocation3 + $0x1], 1 }
 0x280   :  { %1754 = vsyncpa [#allocation6], 1 }
 0x281   :  { %1755 = vsyncpa [#allocation9], 1 }
 0x282   :  { %1756 = vsyncpa [#allocation4], 1 }
 0x283   :  { %1758 = vsyncpa [#allocation4 + $0x1], 1 }
 0x284   :  { %1759 = vsyncpa [#allocation12], 1 }
 0x285   :  { %1761 = vsyncpa [#allocation12 + $0x1], 1 }

</bundles_post_ra>
